<compile_context>
chip_gen: v7x
topology: tpu7x:2x2x1
jax: 0.10.0
libtpu: 0.0.40
codegen_flags: <defaults>
</compile_context>

<pallas_src>
import functools

import jax
import jax.numpy as jnp
from jax.experimental import pallas as pl
from jax.experimental.pallas import tpu as pltpu


# ----------------------------------------------------------------------------
# Fused kernel: conv1 -> IN -> LReLU -> conv2 -> IN -> +identity -> LReLU
# ----------------------------------------------------------------------------
def _basic_block_kernel(x_ref, w1_ref, w2_ref, mask_ref, sel_ref, selt_ref,
                        o_ref, *, width, hw, eps, slope, mxu_dtype):
    # x_ref    : (C, L)   L = Nb*HW lane-packed images (also the residual)
    # w*_ref   : (Cout, 9*Cin) stacked-tap conv weights (tap t = kh*3 + kw)
    # mask_ref : (9, L)   f32 0/1 zero-padding validity per tap, per lane
    # sel_ref  : (L, Nb)  f32 0/1 image-selector (lane -> image reduction)
    # selt_ref : (Nb, L)  f32 0/1 transpose of sel (image -> lane broadcast)
    # o_ref    : (C, L)
    x = x_ref[...].astype(jnp.float32)                        # (C, L)
    C, L = x.shape
    inv_hw = jnp.float32(1.0 / hw)

    masks = mask_ref[...]                                     # (9, L)
    sel = sel_ref[...]                                        # (L, Nb)
    selt = selt_ref[...]                                      # (Nb, L)

    def conv3x3(inp, w_ref):
        # 3x3 same-padding conv as ONE contraction: (Cout, 9*Cin) @ (9*Cin, L).
        cols = []
        for t in range(9):
            dy, dx = t // 3, t % 3
            s = (dy - 1) * width + (dx - 1)        # flat spatial offset of tap t
            tap = inp if s == 0 else pltpu.roll(inp, shift=(-s) % L, axis=1)
            if t != 4:                             # mask in f32 (v5e-friendly)
                tap = tap * masks[t:t + 1, :]
            cols.append(tap.astype(mxu_dtype))     # cast right before the MXU
        stacked = jnp.concatenate(cols, axis=0)    # (9*Cin, L)
        return jnp.dot(w_ref[...], stacked, preferred_element_type=jnp.float32)

    def instance_norm(y):
        # Two-pass, per-image stats via small selector matmuls (no relayout).
        mean = jnp.dot(y, sel, preferred_element_type=jnp.float32) * inv_hw
        yc = y - jnp.dot(mean, selt, preferred_element_type=jnp.float32)
        var = jnp.dot(yc * yc, sel, preferred_element_type=jnp.float32) * inv_hw
        inv = jax.lax.rsqrt(var + eps)                                  # (C, Nb)
        return yc * jnp.dot(inv, selt, preferred_element_type=jnp.float32)

    def leaky_relu(y):
        return jnp.where(y >= 0.0, y, slope * y)

    y1 = leaky_relu(instance_norm(conv3x3(x, w1_ref)))
    y2 = instance_norm(conv3x3(y1, w2_ref))
    o_ref[...] = leaky_relu(y2 + x).astype(o_ref.dtype)


# ----------------------------------------------------------------------------
# Wrapper: HBM-side layout plumbing + constant tables, then one pallas_call
# ----------------------------------------------------------------------------
def basic_block_forward(x_nchw, w1, b1, w2, b2, *, batch_block=None,
                        mxu_dtype=jnp.bfloat16, out_dtype=None):
    """x_nchw: (N, C, H, W); w*: (Cout, Cin, 3, 3) [PyTorch]; b*: (C,).

    Conv biases are accepted for API parity but not used: a per-channel bias
    followed by an affine-free InstanceNorm2d is mathematically a no-op.
    """
    del b1, b2
    N, C, H, W = x_nchw.shape
    HW = H * W
    if out_dtype is None:
        out_dtype = x_nchw.dtype
    mxu_itemsize = jax.dtypes.canonicalize_dtype(mxu_dtype).itemsize
    out_itemsize = jax.dtypes.canonicalize_dtype(out_dtype).itemsize

    # --- choose how many images to lane-pack per grid step -------------------
    # (On v7x pick batch_block so the grid length is a multiple of 2 to keep
    #  both TensorCores busy; here the default just maximizes packing within a
    #  conservative VMEM budget.)
    if batch_block is None:
        if HW % 128 != 0:
            batch_block = N                     # full-array block sidesteps (8,128)
        else:
            budget = 24 << 20                   # per-step working-set budget (v7x-safe)
            per_img = 9 * C * HW * mxu_itemsize + 10 * C * HW * 4
            cap = max(1, budget // max(per_img, 1))
            batch_block = 1
            for nb in range(1, N + 1):
                if N % nb == 0 and nb <= cap:
                    batch_block = nb
    assert N % batch_block == 0
    L = batch_block * HW

    # --- lane-packed activations: (N, C, H, W) -> (C, N*HW) ------------------
    x_packed = x_nchw.reshape(N, C, HW).transpose(1, 0, 2).reshape(C, N * HW)

    # --- stacked-tap weights: (Cout, Cin, kh, kw) -> (Cout, 9*Cin) -----------
    # Row order of the tap stack is (t, cin) with t = kh*3 + kw.
    w1_2d = jnp.transpose(w1, (0, 2, 3, 1)).reshape(C, 9 * C).astype(mxu_dtype)
    w2_2d = jnp.transpose(w2, (0, 2, 3, 1)).reshape(C, 9 * C).astype(mxu_dtype)

    # --- per-tap zero-padding masks (built once, resident in VMEM) -----------
    p = jnp.arange(HW)
    row, col = p // W, p % W
    mask_rows = []
    for t in range(9):
        dy, dx = t // 3, t % 3
        m = jnp.ones((HW,), jnp.bool_)
        if dy == 0:
            m = m & (row >= 1)
        if dy == 2:
            m = m & (row <= H - 2)
        if dx == 0:
            m = m & (col >= 1)
        if dx == 2:
            m = m & (col <= W - 2)
        mask_rows.append(m)
    mask = jnp.tile(jnp.stack(mask_rows, 0).astype(jnp.float32),
                    (1, batch_block))                              # (9, L)

    # --- per-image selector matrices for InstanceNorm stats ------------------
    sel = (jnp.arange(L)[:, None] // HW ==
           jnp.arange(batch_block)[None, :]).astype(jnp.float32)   # (L, Nb)
    selt = sel.T                                                   # (Nb, L)

    kernel = functools.partial(_basic_block_kernel, width=W, hw=HW,
                               eps=1e-5, slope=0.01, mxu_dtype=mxu_dtype)

    # --- cost estimate + explicit VMEM limit ---------------------------------
    flops = int(2 * 2 * C * 9 * C * N * HW          # two 3x3 convs (one GEMM each)
                + 2 * 8 * C * N * HW)               # IN selector matmuls (approx)
    bytes_accessed = int(N * C * HW * (x_nchw.dtype.itemsize + out_itemsize)
                         + 2 * 9 * C * C * mxu_itemsize
                         + (9 + 2 * batch_block) * L * 4)
    cost = pl.CostEstimate(flops=flops, transcendentals=int(2 * N * C),
                           bytes_accessed=bytes_accessed)

    block_bytes = (2 * 2 * C * L * 4                               # x/out, double-buffered
                   + 2 * C * 9 * C * mxu_itemsize                  # resident weights
                   + (9 + 2 * batch_block) * L * 4                 # masks + selectors
                   + 9 * C * L * mxu_itemsize                      # stacked taps
                   + 8 * C * L * 4)                                # f32 temporaries
    vmem_limit = int(min(64 << 20, max(32 << 20, 2 * block_bytes)))

    out = pl.pallas_call(
        kernel,
        out_shape=jax.ShapeDtypeStruct((C, N * HW), out_dtype),
        grid=(N // batch_block,),
        in_specs=[
            pl.BlockSpec((C, L), lambda g: (0, g)),                 # x (and residual)
            pl.BlockSpec((C, 9 * C), lambda g: (0, 0)),             # w1 (resident)
            pl.BlockSpec((C, 9 * C), lambda g: (0, 0)),             # w2 (resident)
            pl.BlockSpec((9, L), lambda g: (0, 0)),                 # tap masks
            pl.BlockSpec((L, batch_block), lambda g: (0, 0)),       # selector
            pl.BlockSpec((batch_block, L), lambda g: (0, 0)),       # selector^T
        ],
        out_specs=pl.BlockSpec((C, L), lambda g: (0, g)),
        compiler_params=pltpu.CompilerParams(
            dimension_semantics=("parallel",),
            vmem_limit_bytes=vmem_limit),
        cost_estimate=cost,
    )(x_packed, w1_2d, w2_2d, mask, sel, selt)

    return out.reshape(C, N, HW).transpose(1, 0, 2).reshape(N, C, H, W)


# ----------------------------------------------------------------------------
# Pure-JAX reference (matches the PyTorch module, bias included)
# ----------------------------------------------------------------------------
def _reference(x_nchw, w1, b1, w2, b2, operand_dtype=jnp.float32):
    def conv(x, w, b):
        y = jax.lax.conv_general_dilated(
            x.astype(operand_dtype), w.astype(operand_dtype),
            window_strides=(1, 1), padding=((1, 1), (1, 1)),
            dimension_numbers=("NCHW", "OIHW", "NCHW"),
            preferred_element_type=jnp.float32)
        return y + b[None, :, None, None]

    def inorm(x, eps=1e-5):
        mean = jnp.mean(x, axis=(2, 3), keepdims=True)
        var = jnp.mean(jnp.square(x - mean), axis=(2, 3), keepdims=True)
        return (x - mean) * jax.lax.rsqrt(var + eps)

    def lrelu(x, s=0.01):
        return jnp.where(x >= 0.0, x, s * x)

    y = lrelu(inorm(conv(x_nchw, w1, b1)))
    y = inorm(conv(y, w2, b2))
    return lrelu(y + x_nchw)


if __name__ == "__main__":
    N, C, H, W = 2, 4, 16, 16
    key = jax.random.PRNGKey(0)
    kx, k1, k2, k3, k4 = jax.random.split(key, 5)

    x = jax.random.normal(kx, (N, C, H, W), dtype=jnp.float32)
    # PyTorch Conv2d layout: weight (Cout, Cin, kh, kw), bias (Cout,)
    w1 = 0.1 * jax.random.normal(k1, (C, C, 3, 3), dtype=jnp.float32)
    b1 = 0.1 * jax.random.normal(k2, (C,), dtype=jnp.float32)
    w2 = 0.1 * jax.random.normal(k3, (C, C, 3, 3), dtype=jnp.float32)
    b2 = 0.1 * jax.random.normal(k4, (C,), dtype=jnp.float32)

    # f32 MXU operands: tight check against the f32 reference.
    fwd_f32 = jax.jit(functools.partial(basic_block_forward,
                                        mxu_dtype=jnp.float32))
    out_f32 = jax.block_until_ready(fwd_f32(x, w1, b1, w2, b2))
    ref_f32 = _reference(x, w1, b1, w2, b2, operand_dtype=jnp.float32)
    assert out_f32.shape == (N, C, H, W)
    err_f32 = float(jnp.max(jnp.abs(out_f32 - ref_f32)))
    assert err_f32 < 1e-3, err_f32

    # bf16 MXU operands (fast path on all gens): check vs bf16-operand reference.
    fwd_bf16 = jax.jit(functools.partial(basic_block_forward,
                                         mxu_dtype=jnp.bfloat16))
    out_bf16 = jax.block_until_ready(fwd_bf16(x, w1, b1, w2, b2))
    ref_bf16 = _reference(x, w1, b1, w2, b2, operand_dtype=jnp.bfloat16)
    err_bf16 = float(jnp.max(jnp.abs(out_bf16 - ref_bf16)))
    assert err_bf16 < 3e-2, err_bf16

    print("KERNEL_OK")
</pallas_src>

<mosaic_0001>
module attributes {stable_mosaic.version = 11 : i64} {
  func.func @_basic_block_kernel(%arg0: i32, %arg1: memref<4x512xf32, #tpu.memory_space<vmem>>, %arg2: memref<4x36xf32, #tpu.memory_space<vmem>>, %arg3: memref<4x36xf32, #tpu.memory_space<vmem>>, %arg4: memref<9x512xf32, #tpu.memory_space<vmem>>, %arg5: memref<512x2xf32, #tpu.memory_space<vmem>>, %arg6: memref<2x512xf32, #tpu.memory_space<vmem>>, %arg7: memref<4x512xf32, #tpu.memory_space<vmem>>) attributes {dimension_semantics = [#tpu.dimension_semantics<parallel>], iteration_bounds = array<i64: 1>, scalar_prefetch = 0 : i64, scratch_operands = 0 : i64, tpu.core_type = #tpu.core_type<tc>, window_params = [{transform_indices = @transform_0, window_bounds = array<i64: 4, 512>}, {pipeline_mode = #tpu.pipeline_mode<synchronous>, transform_indices = @transform_1, window_bounds = array<i64: 4, 36>}, {pipeline_mode = #tpu.pipeline_mode<synchronous>, transform_indices = @transform_2, window_bounds = array<i64: 4, 36>}, {pipeline_mode = #tpu.pipeline_mode<synchronous>, transform_indices = @transform_3, window_bounds = array<i64: 9, 512>}, {pipeline_mode = #tpu.pipeline_mode<synchronous>, transform_indices = @transform_4, window_bounds = array<i64: 512, 2>}, {pipeline_mode = #tpu.pipeline_mode<synchronous>, transform_indices = @transform_5, window_bounds = array<i64: 2, 512>}, {transform_indices = @transform_6, window_bounds = array<i64: 4, 512>}]} {
    %c0 = arith.constant 0 : index
    %c0_0 = arith.constant 0 : index
    %0 = vector.load %arg1[%c0, %c0_0] : memref<4x512xf32, #tpu.memory_space<vmem>>, vector<4x512xf32>
    %c0_1 = arith.constant 0 : index
    %c0_2 = arith.constant 0 : index
    %1 = vector.load %arg4[%c0_1, %c0_2] : memref<9x512xf32, #tpu.memory_space<vmem>>, vector<9x512xf32>
    %c0_3 = arith.constant 0 : index
    %c0_4 = arith.constant 0 : index
    %2 = vector.load %arg5[%c0_3, %c0_4] : memref<512x2xf32, #tpu.memory_space<vmem>>, vector<512x2xf32>
    %c0_5 = arith.constant 0 : index
    %c0_6 = arith.constant 0 : index
    %3 = vector.load %arg6[%c0_5, %c0_6] : memref<2x512xf32, #tpu.memory_space<vmem>>, vector<2x512xf32>
    %c17_i32 = arith.constant 17 : i32
    %4 = tpu.dynamic_rotate %0 by %c17_i32 dim 1 : vector<4x512xf32>, i32 -> vector<4x512xf32>
    %5 = vector.extract_strided_slice %1 {offsets = [0, 0], sizes = [1, 512], strides = [1, 1]} : vector<9x512xf32> to vector<1x512xf32>
    %6 = vector.broadcast %5 : vector<1x512xf32> to vector<4x512xf32>
    %7 = arith.mulf %4, %6 : vector<4x512xf32>
    %c16_i32 = arith.constant 16 : i32
    %8 = tpu.dynamic_rotate %0 by %c16_i32 dim 1 : vector<4x512xf32>, i32 -> vector<4x512xf32>
    %9 = vector.extract_strided_slice %1 {offsets = [1, 0], sizes = [1, 512], strides = [1, 1]} : vector<9x512xf32> to vector<1x512xf32>
    %10 = vector.broadcast %9 : vector<1x512xf32> to vector<4x512xf32>
    %11 = arith.mulf %8, %10 : vector<4x512xf32>
    %c15_i32 = arith.constant 15 : i32
    %12 = tpu.dynamic_rotate %0 by %c15_i32 dim 1 : vector<4x512xf32>, i32 -> vector<4x512xf32>
    %13 = vector.extract_strided_slice %1 {offsets = [2, 0], sizes = [1, 512], strides = [1, 1]} : vector<9x512xf32> to vector<1x512xf32>
    %14 = vector.broadcast %13 : vector<1x512xf32> to vector<4x512xf32>
    %15 = arith.mulf %12, %14 : vector<4x512xf32>
    %c1_i32 = arith.constant 1 : i32
    %16 = tpu.dynamic_rotate %0 by %c1_i32 dim 1 : vector<4x512xf32>, i32 -> vector<4x512xf32>
    %17 = vector.extract_strided_slice %1 {offsets = [3, 0], sizes = [1, 512], strides = [1, 1]} : vector<9x512xf32> to vector<1x512xf32>
    %18 = vector.broadcast %17 : vector<1x512xf32> to vector<4x512xf32>
    %19 = arith.mulf %16, %18 : vector<4x512xf32>
    %c511_i32 = arith.constant 511 : i32
    %20 = tpu.dynamic_rotate %0 by %c511_i32 dim 1 : vector<4x512xf32>, i32 -> vector<4x512xf32>
    %21 = vector.extract_strided_slice %1 {offsets = [5, 0], sizes = [1, 512], strides = [1, 1]} : vector<9x512xf32> to vector<1x512xf32>
    %22 = vector.broadcast %21 : vector<1x512xf32> to vector<4x512xf32>
    %23 = arith.mulf %20, %22 : vector<4x512xf32>
    %c497_i32 = arith.constant 497 : i32
    %24 = tpu.dynamic_rotate %0 by %c497_i32 dim 1 : vector<4x512xf32>, i32 -> vector<4x512xf32>
    %25 = vector.extract_strided_slice %1 {offsets = [6, 0], sizes = [1, 512], strides = [1, 1]} : vector<9x512xf32> to vector<1x512xf32>
    %26 = vector.broadcast %25 : vector<1x512xf32> to vector<4x512xf32>
    %27 = arith.mulf %24, %26 : vector<4x512xf32>
    %c496_i32 = arith.constant 496 : i32
    %28 = tpu.dynamic_rotate %0 by %c496_i32 dim 1 : vector<4x512xf32>, i32 -> vector<4x512xf32>
    %29 = vector.extract_strided_slice %1 {offsets = [7, 0], sizes = [1, 512], strides = [1, 1]} : vector<9x512xf32> to vector<1x512xf32>
    %30 = vector.broadcast %29 : vector<1x512xf32> to vector<4x512xf32>
    %31 = arith.mulf %28, %30 : vector<4x512xf32>
    %c495_i32 = arith.constant 495 : i32
    %32 = tpu.dynamic_rotate %0 by %c495_i32 dim 1 : vector<4x512xf32>, i32 -> vector<4x512xf32>
    %33 = vector.extract_strided_slice %1 {offsets = [8, 0], sizes = [1, 512], strides = [1, 1]} : vector<9x512xf32> to vector<1x512xf32>
    %34 = vector.broadcast %33 : vector<1x512xf32> to vector<4x512xf32>
    %35 = arith.mulf %32, %34 : vector<4x512xf32>
    %36 = tpu.concatenate %7, %11, %15, %19, %0, %23, %27, %31, %35 in 0 : vector<4x512xf32>, vector<4x512xf32>, vector<4x512xf32>, vector<4x512xf32>, vector<4x512xf32>, vector<4x512xf32>, vector<4x512xf32>, vector<4x512xf32>, vector<4x512xf32> -> vector<36x512xf32>
    %c0_7 = arith.constant 0 : index
    %c0_8 = arith.constant 0 : index
    %37 = vector.load %arg2[%c0_7, %c0_8] : memref<4x36xf32, #tpu.memory_space<vmem>>, vector<4x36xf32>
    %cst = arith.constant dense<0.000000e+00> : vector<4x512xf32>
    %38 = tpu.matmul %37, %36, %cst {dimension_numbers = #tpu.dot_dimension_numbers<[1], [0], [0], [1], [0, 0, 1, 1], [], []>} : vector<4x36xf32>, vector<36x512xf32>, vector<4x512xf32> -> vector<4x512xf32>
    %cst_9 = arith.constant dense<0.000000e+00> : vector<4x2xf32>
    %39 = tpu.matmul %38, %2, %cst_9 {dimension_numbers = #tpu.dot_dimension_numbers<[1], [0], [0], [1], [0, 0, 1, 1], [], []>} : vector<4x512xf32>, vector<512x2xf32>, vector<4x2xf32> -> vector<4x2xf32>
    %cst_10 = arith.constant 3.906250e-03 : f32
    %40 = vector.broadcast %cst_10 : f32 to vector<4x2xf32>
    %41 = arith.mulf %39, %40 : vector<4x2xf32>
    %cst_11 = arith.constant dense<0.000000e+00> : vector<4x512xf32>
    %42 = tpu.matmul %41, %3, %cst_11 {dimension_numbers = #tpu.dot_dimension_numbers<[1], [0], [0], [1], [0, 0, 1, 1], [], []>} : vector<4x2xf32>, vector<2x512xf32>, vector<4x512xf32> -> vector<4x512xf32>
    %43 = arith.subf %38, %42 : vector<4x512xf32>
    %44 = arith.mulf %43, %43 : vector<4x512xf32>
    %cst_12 = arith.constant dense<0.000000e+00> : vector<4x2xf32>
    %45 = tpu.matmul %44, %2, %cst_12 {dimension_numbers = #tpu.dot_dimension_numbers<[1], [0], [0], [1], [0, 0, 1, 1], [], []>} : vector<4x512xf32>, vector<512x2xf32>, vector<4x2xf32> -> vector<4x2xf32>
    %cst_13 = arith.constant 3.906250e-03 : f32
    %46 = vector.broadcast %cst_13 : f32 to vector<4x2xf32>
    %47 = arith.mulf %45, %46 : vector<4x2xf32>
    %cst_14 = arith.constant 9.99999974E-6 : f32
    %48 = vector.broadcast %cst_14 : f32 to vector<4x2xf32>
    %49 = arith.addf %47, %48 : vector<4x2xf32>
    %50 = math.rsqrt %49 : vector<4x2xf32>
    %cst_15 = arith.constant dense<0.000000e+00> : vector<4x512xf32>
    %51 = tpu.matmul %50, %3, %cst_15 {dimension_numbers = #tpu.dot_dimension_numbers<[1], [0], [0], [1], [0, 0, 1, 1], [], []>} : vector<4x2xf32>, vector<2x512xf32>, vector<4x512xf32> -> vector<4x512xf32>
    %52 = arith.mulf %43, %51 : vector<4x512xf32>
    %cst_16 = arith.constant 0.000000e+00 : f32
    %53 = vector.broadcast %cst_16 : f32 to vector<4x512xf32>
    %54 = arith.cmpf oge, %52, %53 : vector<4x512xf32>
    %cst_17 = arith.constant 0.00999999977 : f32
    %55 = vector.broadcast %cst_17 : f32 to vector<4x512xf32>
    %56 = arith.mulf %55, %52 : vector<4x512xf32>
    %57 = arith.select %54, %52, %56 : vector<4x512xi1>, vector<4x512xf32>
    %c17_i32_18 = arith.constant 17 : i32
    %58 = tpu.dynamic_rotate %57 by %c17_i32_18 dim 1 : vector<4x512xf32>, i32 -> vector<4x512xf32>
    %59 = vector.extract_strided_slice %1 {offsets = [0, 0], sizes = [1, 512], strides = [1, 1]} : vector<9x512xf32> to vector<1x512xf32>
    %60 = vector.broadcast %59 : vector<1x512xf32> to vector<4x512xf32>
    %61 = arith.mulf %58, %60 : vector<4x512xf32>
    %c16_i32_19 = arith.constant 16 : i32
    %62 = tpu.dynamic_rotate %57 by %c16_i32_19 dim 1 : vector<4x512xf32>, i32 -> vector<4x512xf32>
    %63 = vector.extract_strided_slice %1 {offsets = [1, 0], sizes = [1, 512], strides = [1, 1]} : vector<9x512xf32> to vector<1x512xf32>
    %64 = vector.broadcast %63 : vector<1x512xf32> to vector<4x512xf32>
    %65 = arith.mulf %62, %64 : vector<4x512xf32>
    %c15_i32_20 = arith.constant 15 : i32
    %66 = tpu.dynamic_rotate %57 by %c15_i32_20 dim 1 : vector<4x512xf32>, i32 -> vector<4x512xf32>
    %67 = vector.extract_strided_slice %1 {offsets = [2, 0], sizes = [1, 512], strides = [1, 1]} : vector<9x512xf32> to vector<1x512xf32>
    %68 = vector.broadcast %67 : vector<1x512xf32> to vector<4x512xf32>
    %69 = arith.mulf %66, %68 : vector<4x512xf32>
    %c1_i32_21 = arith.constant 1 : i32
    %70 = tpu.dynamic_rotate %57 by %c1_i32_21 dim 1 : vector<4x512xf32>, i32 -> vector<4x512xf32>
    %71 = vector.extract_strided_slice %1 {offsets = [3, 0], sizes = [1, 512], strides = [1, 1]} : vector<9x512xf32> to vector<1x512xf32>
    %72 = vector.broadcast %71 : vector<1x512xf32> to vector<4x512xf32>
    %73 = arith.mulf %70, %72 : vector<4x512xf32>
    %c511_i32_22 = arith.constant 511 : i32
    %74 = tpu.dynamic_rotate %57 by %c511_i32_22 dim 1 : vector<4x512xf32>, i32 -> vector<4x512xf32>
    %75 = vector.extract_strided_slice %1 {offsets = [5, 0], sizes = [1, 512], strides = [1, 1]} : vector<9x512xf32> to vector<1x512xf32>
    %76 = vector.broadcast %75 : vector<1x512xf32> to vector<4x512xf32>
    %77 = arith.mulf %74, %76 : vector<4x512xf32>
    %c497_i32_23 = arith.constant 497 : i32
    %78 = tpu.dynamic_rotate %57 by %c497_i32_23 dim 1 : vector<4x512xf32>, i32 -> vector<4x512xf32>
    %79 = vector.extract_strided_slice %1 {offsets = [6, 0], sizes = [1, 512], strides = [1, 1]} : vector<9x512xf32> to vector<1x512xf32>
    %80 = vector.broadcast %79 : vector<1x512xf32> to vector<4x512xf32>
    %81 = arith.mulf %78, %80 : vector<4x512xf32>
    %c496_i32_24 = arith.constant 496 : i32
    %82 = tpu.dynamic_rotate %57 by %c496_i32_24 dim 1 : vector<4x512xf32>, i32 -> vector<4x512xf32>
    %83 = vector.extract_strided_slice %1 {offsets = [7, 0], sizes = [1, 512], strides = [1, 1]} : vector<9x512xf32> to vector<1x512xf32>
    %84 = vector.broadcast %83 : vector<1x512xf32> to vector<4x512xf32>
    %85 = arith.mulf %82, %84 : vector<4x512xf32>
    %c495_i32_25 = arith.constant 495 : i32
    %86 = tpu.dynamic_rotate %57 by %c495_i32_25 dim 1 : vector<4x512xf32>, i32 -> vector<4x512xf32>
    %87 = vector.extract_strided_slice %1 {offsets = [8, 0], sizes = [1, 512], strides = [1, 1]} : vector<9x512xf32> to vector<1x512xf32>
    %88 = vector.broadcast %87 : vector<1x512xf32> to vector<4x512xf32>
    %89 = arith.mulf %86, %88 : vector<4x512xf32>
    %90 = tpu.concatenate %61, %65, %69, %73, %57, %77, %81, %85, %89 in 0 : vector<4x512xf32>, vector<4x512xf32>, vector<4x512xf32>, vector<4x512xf32>, vector<4x512xf32>, vector<4x512xf32>, vector<4x512xf32>, vector<4x512xf32>, vector<4x512xf32> -> vector<36x512xf32>
    %c0_26 = arith.constant 0 : index
    %c0_27 = arith.constant 0 : index
    %91 = vector.load %arg3[%c0_26, %c0_27] : memref<4x36xf32, #tpu.memory_space<vmem>>, vector<4x36xf32>
    %cst_28 = arith.constant dense<0.000000e+00> : vector<4x512xf32>
    %92 = tpu.matmul %91, %90, %cst_28 {dimension_numbers = #tpu.dot_dimension_numbers<[1], [0], [0], [1], [0, 0, 1, 1], [], []>} : vector<4x36xf32>, vector<36x512xf32>, vector<4x512xf32> -> vector<4x512xf32>
    %cst_29 = arith.constant dense<0.000000e+00> : vector<4x2xf32>
    %93 = tpu.matmul %92, %2, %cst_29 {dimension_numbers = #tpu.dot_dimension_numbers<[1], [0], [0], [1], [0, 0, 1, 1], [], []>} : vector<4x512xf32>, vector<512x2xf32>, vector<4x2xf32> -> vector<4x2xf32>
    %cst_30 = arith.constant 3.906250e-03 : f32
    %94 = vector.broadcast %cst_30 : f32 to vector<4x2xf32>
    %95 = arith.mulf %93, %94 : vector<4x2xf32>
    %cst_31 = arith.constant dense<0.000000e+00> : vector<4x512xf32>
    %96 = tpu.matmul %95, %3, %cst_31 {dimension_numbers = #tpu.dot_dimension_numbers<[1], [0], [0], [1], [0, 0, 1, 1], [], []>} : vector<4x2xf32>, vector<2x512xf32>, vector<4x512xf32> -> vector<4x512xf32>
    %97 = arith.subf %92, %96 : vector<4x512xf32>
    %98 = arith.mulf %97, %97 : vector<4x512xf32>
    %cst_32 = arith.constant dense<0.000000e+00> : vector<4x2xf32>
    %99 = tpu.matmul %98, %2, %cst_32 {dimension_numbers = #tpu.dot_dimension_numbers<[1], [0], [0], [1], [0, 0, 1, 1], [], []>} : vector<4x512xf32>, vector<512x2xf32>, vector<4x2xf32> -> vector<4x2xf32>
    %cst_33 = arith.constant 3.906250e-03 : f32
    %100 = vector.broadcast %cst_33 : f32 to vector<4x2xf32>
    %101 = arith.mulf %99, %100 : vector<4x2xf32>
    %cst_34 = arith.constant 9.99999974E-6 : f32
    %102 = vector.broadcast %cst_34 : f32 to vector<4x2xf32>
    %103 = arith.addf %101, %102 : vector<4x2xf32>
    %104 = math.rsqrt %103 : vector<4x2xf32>
    %cst_35 = arith.constant dense<0.000000e+00> : vector<4x512xf32>
    %105 = tpu.matmul %104, %3, %cst_35 {dimension_numbers = #tpu.dot_dimension_numbers<[1], [0], [0], [1], [0, 0, 1, 1], [], []>} : vector<4x2xf32>, vector<2x512xf32>, vector<4x512xf32> -> vector<4x512xf32>
    %106 = arith.mulf %97, %105 : vector<4x512xf32>
    %107 = arith.addf %106, %0 : vector<4x512xf32>
    %cst_36 = arith.constant 0.000000e+00 : f32
    %108 = vector.broadcast %cst_36 : f32 to vector<4x512xf32>
    %109 = arith.cmpf oge, %107, %108 : vector<4x512xf32>
    %cst_37 = arith.constant 0.00999999977 : f32
    %110 = vector.broadcast %cst_37 : f32 to vector<4x512xf32>
    %111 = arith.mulf %110, %107 : vector<4x512xf32>
    %112 = arith.select %109, %107, %111 : vector<4x512xi1>, vector<4x512xf32>
    %c0_38 = arith.constant 0 : index
    %c0_39 = arith.constant 0 : index
    %113 = vector.load %arg7[%c0_38, %c0_39] : memref<4x512xf32, #tpu.memory_space<vmem>>, vector<4x512xf32>
    tpu.vector_store %arg7[%c0_38, %c0_39], %112 {strides = array<i32>} : memref<4x512xf32, #tpu.memory_space<vmem>>, vector<4x512xf32>,
    return
  }
  func.func @transform_0(%arg0: i32) -> (i32, i32) {
    %c0_i32 = arith.constant 0 : i32
    %c0_i32_0 = arith.constant 0 : i32
    return %c0_i32, %arg0 : i32, i32
  }
  func.func @transform_1(%arg0: i32) -> (i32, i32) {
    %c0_i32 = arith.constant 0 : i32
    %c0_i32_0 = arith.constant 0 : i32
    %c0_i32_1 = arith.constant 0 : i32
    return %c0_i32, %c0_i32_0 : i32, i32
  }
  func.func @transform_2(%arg0: i32) -> (i32, i32) {
    %c0_i32 = arith.constant 0 : i32
    %c0_i32_0 = arith.constant 0 : i32
    %c0_i32_1 = arith.constant 0 : i32
    return %c0_i32, %c0_i32_0 : i32, i32
  }
  func.func @transform_3(%arg0: i32) -> (i32, i32) {
    %c0_i32 = arith.constant 0 : i32
    %c0_i32_0 = arith.constant 0 : i32
    %c0_i32_1 = arith.constant 0 : i32
    return %c0_i32, %c0_i32_0 : i32, i32
  }
  func.func @transform_4(%arg0: i32) -> (i32, i32) {
    %c0_i32 = arith.constant 0 : i32
    %c0_i32_0 = arith.constant 0 : i32
    %c0_i32_1 = arith.constant 0 : i32
    return %c0_i32, %c0_i32_0 : i32, i32
  }
  func.func @transform_5(%arg0: i32) -> (i32, i32) {
    %c0_i32 = arith.constant 0 : i32
    %c0_i32_0 = arith.constant 0 : i32
    %c0_i32_1 = arith.constant 0 : i32
    return %c0_i32, %c0_i32_0 : i32, i32
  }
  func.func @transform_6(%arg0: i32) -> (i32, i32) {
    %c0_i32 = arith.constant 0 : i32
    %c0_i32_0 = arith.constant 0 : i32
    return %c0_i32, %arg0 : i32, i32
  }
}

</mosaic_0001>

<bundles_post_ra>
// kernel: basic_block_forward.1
= control target key start
LH: loop header
LB: loop body
LE: loop exit
PB: predicated region body
PF: predicated region fallthrough
CT: control target
= control target key end

     0   :  { %s2813_s25 = smov 16   ;;  %s2814_s26 = smov 1   ;;  %v3894_v4 = vmov 0.0   ;;  %v112_v7 = vlaneseq  ;;  %vm418_vm3 = vcmask 1043456   ;;  %vm436_vm9 = vcmask 293888   ;;  %s3887_s0 = inlined_call_operand.vmem [shape: f32[4,512], index: 0, kind: input, shape index: {}]   ;;  %s3888_s3 = inlined_call_operand.vmem [shape: f32[9,512], index: 3, kind: input, shape index: {}]   ;;  %s3889_s4 = inlined_call_operand.vmem [shape: f32[512,2], index: 4, kind: input, shape index: {}]   ;;  %s3890_s1 = inlined_call_operand.vmem [shape: f32[4,36], index: 1, kind: input, shape index: {}]   ;;  %s3891_s5 = inlined_call_operand.vmem [shape: f32[2,512], index: 5, kind: input, shape index: {}]   ;;  %s3892_s2 = inlined_call_operand.vmem [shape: f32[4,36], index: 2, kind: input, shape index: {}]   ;;  %s3893_s6 = inlined_call_operand.vmem [shape: f32[4,512], index: 6, kind: output, shape index: {}]  }
   0x1   :  { %v2861_v0 = vld [vmem:[%s3887_s0 + $0x8] sm:$0xff]  ;;  %v2866_v1 = vld [vmem:[%s3887_s0] sm:$0xff]  ;;  %s2815_s27 = smov 17   ;;  %s2816_s28 = smov 15   ;;  %516 = vmatprep.mubr.f32.mxu0 %v3894_v4  ;;  %587 = vmatprep.mubr.f32.mxu1 %v3894_v4  ;;  %v2955_v16 = vld [vmem:[%s3888_s3 + $0x18] sm:$0xff]  ;;  %vm757_vm10 = vcmask 1041408  }
   0x2   :  { %143 = vrot.lane.b32.xlu1 %v2861_v0, %s2813_s25  ;;  %139 = vrot.lane.b32.xlu0 %v2866_v1, %s2813_s25  ;;  %v2874_v2 = vcombine.high %v2861_v0, %v2861_v0  ;;  %v2878_v3 = vcombine.high %v2866_v1, %v2866_v1  ;;  %s2817_s29 = smov 127   ;;  %s2818_s30 = smov 112   ;;  %v2942_v10 = vshrl.u32 %v112_v7, 7  ;;  %v2944_v13 = vand.u32 127, %v112_v7  ;;  %v2950_v15 = vld [vmem:[%s3888_s3] sm:$0xff]  ;;  %v2961_v20 = vld [vmem:[%s3888_s3 + $0x8] sm:$0xff] }
   0x3   :  { %s2819_s7 = smov 113   ;;  %s2821_s8 = smov 111   ;;  %v2966_v21 = vld [vmem:[%s3888_s3 + $0x10] sm:$0xff]  ;;  %vm753_vm11 = vcmask 15360  }
   0x4   :  { %3947 = vst [vmem:[#allocation2_spill] sm:$0xff] %v2874_v2  ;;  %3948 = vst [vmem:[#allocation3_spill] sm:$0xff] %v2878_v3  ;;  %v154_v14 = vsub.s32 1, %v2942_v10  ;;  %v220_v17 = vsub.s32 3, %v2942_v10  ;;  %v121_v22 = vsub.s32 0, %v2942_v10  ;;  %vm147_vm0 = vcmp.lt.s32.totalorder %v2944_v13, 16 }
   0x5   :  { %vm213_vm1 = vcmp.lt.s32.totalorder %v2944_v13, 1  ;;  %vm114_vm2 = vcmp.lt.s32.totalorder %v2944_v13, 17  ;;  %v187_v30 = vsub.s32 2, %v2942_v10  ;;  %vm180_vm4 = vcmp.lt.s32.totalorder %v2944_v13, 15 }
   0x6   :  { %145 = vrot.lane.b32.xlu1 %v2874_v2, %s2813_s25  ;;  %141 = vrot.lane.b32.xlu0 %v2878_v3, %s2813_s25  ;;  %v2971_v23 = vrot.slane %v2950_v15, %v154_v14  ;;  %v2974_v24 = vrot.slane %v2955_v16, %v154_v14  ;;  %v2979_v25 = vrot.slane %v2961_v20, %v154_v14  ;;  %vm246_vm5 = vcmp.lt.s32.totalorder %v2944_v13, 127 }
   0x7   :  { %v2982_v26 = vrot.slane %v2966_v21, %v154_v14  ;;  %v2985_v27 = vrot.slane %v2961_v20, %v220_v17  ;;  %v2989_v31 = vrot.slane %v2950_v15, %v220_v17  ;;  %v2992_v32 = vrot.slane %v2966_v21, %v220_v17 }
   0x8   :  { %v2995_v33 = vrot.slane %v2955_v16, %v220_v17  ;;  %v2998_v34 = vrot.slane %v2961_v20, %v121_v22  ;;  %v3005_v37 = vrot.slane %v2950_v15, %v121_v22  ;;  %v3008_v38 = vrot.slane %v2966_v21, %v121_v22 }
   0x9   :  { %v3015_v41 = vrot.slane %v2955_v16, %v121_v22  ;;  %v3023_v46 = vrot.slane %v2961_v20, %v187_v30  ;;  %v3034_v53 = vrot.slane %v2950_v15, %v187_v30  ;;  %v3037_v54 = vrot.slane %v2966_v21, %v187_v30 }
   0xa   :  { %207 = vrot.lane.b32.xlu1 %v2878_v3, %s2814_s26  ;;  %205 = vrot.lane.b32.xlu0 %v2866_v1, %s2814_s26  ;;  %v3044_v58 = vrot.slane %v2955_v16, %v187_v30  ;;  %vm312_vm6 = vcmp.lt.s32.totalorder %v2944_v13, 112  ;;  %vm279_vm7 = vcmp.lt.s32.totalorder %v2944_v13, 113  ;;  %vm345_vm8 = vcmp.lt.s32.totalorder %v2944_v13, 111 }
   0xb   :  { %3949 = vst [vmem:[#allocation4_spill] sm:$0xff] %v3034_v53 }
   0xc   :  { %3950 = vst [vmem:[#allocation5_spill] sm:$0xff] %v3044_v58 }
   0xe   :  { %211 = vrot.lane.b32.xlu1 %v2874_v2, %s2814_s26  ;;  %209 = vrot.lane.b32.xlu0 %v2861_v0, %s2814_s26 }
  0x12   :  { %106 = vrot.lane.b32.xlu1 %v2878_v3, %s2815_s27  ;;  %104 = vrot.lane.b32.xlu0 %v2866_v1, %s2815_s27 }
  0x16   :  { %110 = vrot.lane.b32.xlu1 %v2874_v2, %s2815_s27  ;;  %108 = vrot.lane.b32.xlu0 %v2861_v0, %s2815_s27 }
  0x1a   :  { %174 = vrot.lane.b32.xlu1 %v2878_v3, %s2816_s28  ;;  %172 = vrot.lane.b32.xlu0 %v2866_v1, %s2816_s28 }
  0x1e   :  { %178 = vrot.lane.b32.xlu1 %v2874_v2, %s2816_s28  ;;  %176 = vrot.lane.b32.xlu0 %v2861_v0, %s2816_s28 }
  0x22   :  { %240 = vrot.lane.b32.xlu1 %v2878_v3, %s2817_s29  ;;  %238 = vrot.lane.b32.xlu0 %v2866_v1, %s2817_s29 }
  0x26   :  { %244 = vrot.lane.b32.xlu1 %v2874_v2, %s2817_s29  ;;  %242 = vrot.lane.b32.xlu0 %v2861_v0, %s2817_s29 }
  0x2a   :  { %306 = vrot.lane.b32.xlu1 %v2878_v3, %s2818_s30  ;;  %304 = vrot.lane.b32.xlu0 %v2866_v1, %s2818_s30 }
  0x2e   :  { %310 = vrot.lane.b32.xlu1 %v2874_v2, %s2818_s30  ;;  %308 = vrot.lane.b32.xlu0 %v2861_v0, %s2818_s30 }
  0x32   :  { %273 = vrot.lane.b32.xlu1 %v2878_v3, %s2819_s7  ;;  %271 = vrot.lane.b32.xlu0 %v2866_v1, %s2819_s7 }
  0x36   :  { %277 = vrot.lane.b32.xlu1 %v2874_v2, %s2819_s7  ;;  %275 = vrot.lane.b32.xlu0 %v2861_v0, %s2819_s7 }
  0x3a   :  { %339 = vrot.lane.b32.xlu1 %v2878_v3, %s2821_s8  ;;  %337 = vrot.lane.b32.xlu0 %v2866_v1, %s2821_s8 }
  0x3e   :  { %343 = vrot.lane.b32.xlu1 %v2874_v2, %s2821_s8  ;;  %341 = vrot.lane.b32.xlu0 %v2861_v0, %s2821_s8 }
  0x74   :  { %v144_v5 = vpop.permute.xlu1 %143  ;;  %v140_v6 = vpop.permute.xlu0 %139 }
  0x78   :  { %v146_v8 = vpop.permute.xlu1 %145  ;;  %v142_v9 = vpop.permute.xlu0 %141 }
  0x79   :  { %v148_v35 = vsel %vm147_vm0, %v144_v5, %v146_v8  ;;  %v151_v36 = vsel %vm147_vm0, %v146_v8, %v140_v6  ;;  %v150_v39 = vsel %vm147_vm0, %v140_v6, %v142_v9  ;;  %v149_v42 = vsel %vm147_vm0, %v142_v9, %v144_v5 }
  0x7a   :  { %v168_v47 = vmul.f32 %v2971_v23, %v151_v36  ;;  %v171_v48 = vmul.f32 %v2974_v24, %v148_v35  ;;  %v169_v51 = vmul.f32 %v2979_v25, %v150_v39  ;;  %v170_v55 = vmul.f32 %v2982_v26, %v149_v42 }
  0x7c   :  { %v208_v11 = vpop.permute.xlu1 %207  ;;  %v206_v12 = vpop.permute.xlu0 %205  ;;  %v374_v6 = vrot.slane %v168_v47, 4  ;;  %v377_v7 = vrot.slane %v171_v48, 4 }
  0x7d   :  { %v216_v40 = vsel %vm213_vm1, %v206_v12, %v208_v11 }
  0x7e   :  { %v235_v52 = vmul.f32 %v2985_v27, %v216_v40 }
  0x80   :  { %v212_v18 = vpop.permute.xlu1 %211  ;;  %v210_v19 = vpop.permute.xlu0 %209 }
  0x81   :  { %v217_v43 = vsel %vm213_vm1, %v212_v18, %v206_v12  ;;  %v215_v49 = vsel %vm213_vm1, %v208_v11, %v210_v19  ;;  %v214_v57 = vsel %vm213_vm1, %v210_v19, %v212_v18  ;;  %v375_v11 = vrot.slane %v169_v51, 4 }
  0x82   :  { %v234_v56 = vmul.f32 %v2989_v31, %v217_v43  ;;  %v236_v59 = vmul.f32 %v2992_v32, %v215_v49  ;;  %v387_v12 = vrot.slane %v235_v52, 4  ;;  %v237_v14 = vmul.f32 %v2995_v33, %v214_v57 }
  0x83   :  { %v376_v18 = vrot.slane %v170_v55, 4 }
  0x84   :  { %v107_v28 = vpop.permute.xlu1 %106  ;;  %v105_v29 = vpop.permute.xlu0 %104  ;;  %v386_v19 = vrot.slane %v234_v56, 4  ;;  %v388_v30 = vrot.slane %v236_v59, 4  ;;  %v389_v47 = vrot.slane %v237_v14, 4 }
  0x85   :  { %v117_v50 = vsel %vm114_vm2, %v105_v29, %v107_v28 }
  0x86   :  { %v136_v60 = vmul.f32 %v2998_v34, %v117_v50 }
  0x88   :  { %v111_v44 = vpop.permute.xlu1 %110  ;;  %v109_v45 = vpop.permute.xlu0 %108  ;;  %v420_v39 = vsel %vm418_vm3, %v136_v60, %v375_v11 }
  0x89   :  { %v118_v61 = vsel %vm114_vm2, %v111_v44, %v105_v29  ;;  %v115_v62 = vsel %vm114_vm2, %v109_v45, %v111_v44  ;;  %v116_v8 = vsel %vm114_vm2, %v107_v28, %v109_v45 }
  0x8a   :  { %v135_v22 = vmul.f32 %v3005_v37, %v118_v61  ;;  %v138_v29 = vmul.f32 %v3015_v41, %v115_v62  ;;  %v137_v35 = vmul.f32 %v3008_v38, %v116_v8 }
  0x8c   :  { %v175_v63 = vpop.permute.xlu1 %174  ;;  %v173_v5 = vpop.permute.xlu0 %172  ;;  %v419_v51 = vsel %vm418_vm3, %v135_v22, %v374_v6  ;;  %v422_v52 = vsel %vm418_vm3, %v138_v29, %v377_v7  ;;  %v421_v60 = vsel %vm418_vm3, %v137_v35, %v376_v18  ;;  %v253_v7 = vsub.s32 5, %v2942_v10 }
  0x8d   :  { %v183_v9 = vsel %vm180_vm4, %v173_v5, %v175_v63  ;;  %v286_v29 = vsub.s32 6, %v2942_v10 }
  0x8e   :  { %v202_v17 = vmul.f32 %v3023_v46, %v183_v9  ;;  %v319_v9 = vsub.s32 7, %v2942_v10  ;;  %v3082_v14 = vrot.slane %v2950_v15, %v253_v7  ;;  %v3089_v18 = vrot.slane %v2961_v20, %v253_v7 }
  0x90   :  { %v179_v36 = vpop.permute.xlu1 %178  ;;  %v177_v28 = vpop.permute.xlu0 %176  ;;  %v424_v40 = vsel %vm418_vm3, %v202_v17, %v387_v12  ;;  %3951 = vst [vmem:[#allocation6_spill] sm:$0xff] %v3082_v14  ;;  %v3085_v17 = vrot.slane %v2955_v16, %v253_v7  ;;  %3953 = vst [vmem:[#allocation8_spill] sm:$0xff] %v3089_v18  ;;  %v3095_v22 = vrot.slane %v2950_v15, %v319_v9 }
  0x91   :  { %v184_v42 = vsel %vm180_vm4, %v179_v36, %v173_v5  ;;  %v181_v43 = vsel %vm180_vm4, %v177_v28, %v179_v36  ;;  %v182_v44 = vsel %vm180_vm4, %v175_v63, %v177_v28  ;;  %v2506_v45 = vpack.c.bf16 %v424_v40, %v420_v39 }
  0x92   :  { %v201_v48 = vmul.f32 %v3034_v53, %v184_v42  ;;  %v203_v49 = vmul.f32 %v3037_v54, %v182_v44  ;;  %v204_v50 = vmul.f32 %v3044_v58, %v181_v43  ;;  %3952 = vst [vmem:[#allocation7_spill] sm:$0xff] %v3085_v17  ;;  %3955 = vst [vmem:[#allocation10_spill] sm:$0xff] %v3095_v22 }
  0x93   :  { %2507 = vmatprep.subr.bf16.mxu0 %v2506_v45  ;;  %v3103_v36 = vrot.slane %v2955_v16, %v319_v9  ;;  %v3106_v39 = vrot.slane %v2961_v20, %v319_v9 }
  0x94   :  { %v241_v55 = vpop.permute.xlu1 %240  ;;  %v239_v56 = vpop.permute.xlu0 %238  ;;  %v423_v57 = vsel %vm418_vm3, %v201_v48, %v386_v19  ;;  %v426_v59 = vsel %vm418_vm3, %v204_v50, %v389_v47  ;;  %v425_v61 = vsel %vm418_vm3, %v203_v49, %v388_v30  ;;  %v3092_v19 = vrot.slane %v2966_v21, %v253_v7 }
  0x95   :  { %v2508_v62 = vpack.c.bf16 %v423_v57, %v419_v51  ;;  %v2514_v63 = vpack.c.bf16 %v426_v59, %v422_v52  ;;  %v2516_v5 = vpack.c.bf16 %v425_v61, %v421_v60  ;;  %3956 = vst [vmem:[#allocation11_spill] sm:$0xff] %v3103_v36  ;;  %3957 = vst [vmem:[#allocation12_spill] sm:$0xff] %v3106_v39 }
  0x96   :  { %3954 = vst [vmem:[#allocation9_spill] sm:$0xff] %v3092_v19  ;;  %v249_v42 = vsel %vm246_vm5, %v239_v56, %v241_v55  ;;  %v3117_v47 = vrot.slane %v2966_v21, %v319_v9  ;;  %v3127_v52 = vrot.slane %v2950_v15, %v286_v29  ;;  %v3138_v15 = vrot.slane %v2955_v16, %v286_v29 }
  0x97   :  { %2509 = vmatpush1.bf16.msra.mxu0 %v2508_v62  ;;  %2515 = vmatprep.subr.bf16.mxu1 %v2514_v63 }
  0x98   :  { %v245_v8 = vpop.permute.xlu1 %244  ;;  %2517 = vmatpush1.bf16.msra.mxu1 %v2516_v5  ;;  %v243_v6 = vpop.permute.xlu0 %242  ;;  %3958 = vst [vmem:[#allocation13_spill] sm:$0xff] %v3117_v47  ;;  %3959 = vst [vmem:[#allocation14_spill] sm:$0xff] %v3127_v52 }
  0x99   :  { %v250_v30 = vsel %vm246_vm5, %v245_v8, %v239_v56  ;;  %v248_v35 = vsel %vm246_vm5, %v241_v55, %v243_v6  ;;  %v247_v43 = vsel %vm246_vm5, %v243_v6, %v245_v8  ;;  %v267_v55 = vmul.f32 %v3082_v14, %v249_v42  ;;  %3960 = vst [vmem:[#allocation15_spill] sm:$0xff] %v3138_v15 }
  0x9a   :  { %v270_v49 = vmul.f32 %v3085_v17, %v250_v30  ;;  %v268_v50 = vmul.f32 %v3089_v18, %v248_v35  ;;  %v269_v56 = vmul.f32 %v3092_v19, %v247_v43  ;;  %v3141_v8 = vrot.slane %v2961_v20, %v286_v29 }
  0x9b   :  { %v3144_v6 = vrot.slane %v2966_v21, %v286_v29 }
  0x9c   :  { %v307_v11 = vpop.permute.xlu1 %306  ;;  %v305_v12 = vpop.permute.xlu0 %304  ;;  %3961 = vst [vmem:[#allocation16_spill] sm:$0xff] %v3141_v8  ;;  %v401_v7 = vrot.slane %v270_v49, 4  ;;  %v399_v9 = vrot.slane %v268_v50, 4  ;;  %v400_v30 = vrot.slane %v269_v56, 4 }
  0x9d   :  { %v315_v44 = vsel %vm312_vm6, %v305_v12, %v307_v11  ;;  %3962 = vst [vmem:[#allocation17_spill] sm:$0xff] %v3144_v6 }
  0x9e   :  { %v333_v57 = vmul.f32 %v3095_v22, %v315_v44  ;;  %v428_v49 = vsel %vm418_vm3, %v2878_v3, %v399_v9  ;;  %v430_v50 = vsel %vm418_vm3, %v2874_v2, %v401_v7  ;;  %v3172_v7 = vld [vmem:[%s3888_s3 + $0x20] ss:$0 sm:$0xff]  ;;  %v43_v2 = vld [vmem:[%s3889_s4 + $0x50] sm:$0xff]  ;;  %v44_v3 = vld [vmem:[%s3889_s4 + $0x58] sm:$0xff] }
  0x9f   :  { %3963 = vst [vmem:[#allocation18_spill] sm:$0xff] %v3172_v7 }
  0xa0   :  { %v311_v28 = vpop.permute.xlu1 %310  ;;  %v309_v40 = vpop.permute.xlu0 %308  ;;  %v410_v35 = vrot.slane %v333_v57, 4 }
  0xa1   :  { %v316_v45 = vsel %vm312_vm6, %v311_v28, %v305_v12  ;;  %v314_v48 = vsel %vm312_vm6, %v307_v11, %v309_v40  ;;  %v313_v51 = vsel %vm312_vm6, %v309_v40, %v311_v28  ;;  %v398_v12 = vrot.slane %v267_v55, 4 }
  0xa2   :  { %v336_v59 = vmul.f32 %v3103_v36, %v316_v45  ;;  %v334_v62 = vmul.f32 %v3106_v39, %v314_v48  ;;  %v335_v5 = vmul.f32 %v3117_v47, %v313_v51  ;;  %v97_v39 = vld [vmem:[%s3891_s5] sm:$0xff] }
  0xa3   :  { %v736_v17 = vcombine.high %v97_v39, %v97_v39 }
  0xa4   :  { %v274_v60 = vpop.permute.xlu1 %273  ;;  %v272_v61 = vpop.permute.xlu0 %271  ;;  %v413_v28 = vrot.slane %v336_v59, 4  ;;  %v411_v43 = vrot.slane %v334_v62, 4  ;;  %v412_v29 = vrot.slane %v335_v5, 4  ;;  %v427_v5 = vsel %vm418_vm3, %v2866_v1, %v398_v12  ;;  %v3187_v1 = vld [vmem:[%s3888_s3 + $0x30] ss:$0 sm:$0xff]  ;;  %v49_v12 = vld [vmem:[%s3889_s4 + $0x80] sm:$0xff] }
  0xa5   :  { %v282_v63 = vsel %vm279_vm7, %v272_v61, %v274_v60  ;;  %3966 = vst [vmem:[#allocation21_spill] sm:$0xff] %v3187_v1 }
  0xa6   :  { %v300_v11 = vmul.f32 %v3127_v52, %v282_v63 }
  0xa8   :  { %v278_v40 = vpop.permute.xlu1 %277  ;;  %v276_v42 = vpop.permute.xlu0 %275  ;;  %v431_v51 = vsel %vm418_vm3, %v300_v11, %v410_v35  ;;  %v3177_v11 = vld [vmem:[%s3888_s3 + $0x38] ss:$0 sm:$0xff] }
  0xa9   :  { %v283_v16 = vsel %vm279_vm7, %v278_v40, %v272_v61  ;;  %v280_v20 = vsel %vm279_vm7, %v276_v42, %v278_v40  ;;  %v281_v21 = vsel %vm279_vm7, %v274_v60, %v276_v42  ;;  %v429_v60 = vsel %vm418_vm3, %v2861_v0, %v400_v30  ;;  %3964 = vst [vmem:[#allocation19_spill] sm:$0xff] %v3177_v11  ;;  %v3182_v0 = vld [vmem:[%s3888_s3 + $0x28] ss:$0 sm:$0xff] }
  0xaa   :  { %v303_v44 = vmul.f32 %v3138_v15, %v283_v16  ;;  %v301_v45 = vmul.f32 %v3141_v8, %v281_v21  ;;  %v302_v48 = vmul.f32 %v3144_v6, %v280_v20  ;;  %v2512_v35 = vpack.c.bf16 %v431_v51, %v427_v5  ;;  %3965 = vst [vmem:[#allocation20_spill] sm:$0xff] %v3182_v0  ;;  %v50_v30 = vld [vmem:[%s3889_s4 + $0x88] sm:$0xff]  ;;  %v33_v20 = vld [vmem:[%s3889_s4] sm:$0xff] }
  0xab   :  { %v82_v16 = vld [vmem:[%s3889_s4 + $0x188] sm:$0xff] }
  0xac   :  { %v340_v55 = vpop.permute.xlu1 %339  ;;  %v338_v56 = vpop.permute.xlu0 %337  ;;  %v432_v57 = vsel %vm418_vm3, %v301_v45, %v411_v43  ;;  %v434_v59 = vsel %vm418_vm3, %v303_v44, %v413_v28  ;;  %v433_v61 = vsel %vm418_vm3, %v302_v48, %v412_v29  ;;  %v81_v28 = vld [vmem:[%s3889_s4 + $0x180] sm:$0xff]  ;;  %v34_v21 = vld [vmem:[%s3889_s4 + $0x8] sm:$0xff] }
  0xad   :  { %v2510_v62 = vpack.c.bf16 %v432_v57, %v428_v49  ;;  %v2518_v63 = vpack.c.bf16 %v434_v59, %v430_v50  ;;  %v2520_v9 = vpack.c.bf16 %v433_v61, %v429_v60  ;;  %v348_v40 = vsel %vm345_vm8, %v338_v56, %v340_v55  ;;  %v65_v48 = vld [vmem:[%s3889_s4 + $0x100] sm:$0xff]  ;;  %v66_v49 = vld [vmem:[%s3889_s4 + $0x108] sm:$0xff]  ;;  %v51_v50 = vld [vmem:[%s3889_s4 + $0x90] sm:$0xff] }
  0xae   :  { %v83_v59 = vld [vmem:[%s3889_s4 + $0x190] sm:$0xff]  ;;  %v84_v60 = vld [vmem:[%s3889_s4 + $0x198] sm:$0xff]  ;;  %v366_v61 = vmul.f32 %v3172_v7, %v348_v40  ;;  %v3242_v5 = vpack.c.bf16 %v82_v16, %v81_v28  ;;  %v53_v16 = vld [vmem:[%s3889_s4 + $0xa0] sm:$0xff] }
  0xaf   :  { %2511 = vmatprep.subr.bf16.mxu0 %v2510_v62  ;;  %2519 = vmatprep.subr.bf16.mxu1 %v2518_v63  ;;  %v435_v62 = vld [vmem:[%s3890_s1] sm:$0xf]  ;;  %v3240_v63 = vpack.c.bf16 %v50_v30, %v49_v12  ;;  %v35_v40 = vld [vmem:[%s3889_s4 + $0x10] sm:$0xff]  ;;  %v3260_v30 = vpack.c.bf16 %v84_v60, %v83_v59  ;;  %v56_v59 = vld [vmem:[%s3889_s4 + $0xb8] sm:$0xff] }
  0xb0   :  { %v344_v42 = vpop.permute.xlu1 %343  ;;  %2513 = vmatpush1.bf16.msra.mxu0 %v2512_v35  ;;  %2521 = vmatpush1.bf16.msra.mxu1 %v2520_v9  ;;  %v342_v43 = vpop.permute.xlu0 %341  ;;  %v3246_v9 = vpack.c.bf16 %v34_v21, %v33_v20  ;;  %v3248_v35 = vpack.c.bf16 %v66_v49, %v65_v48  ;;  %v67_v28 = vld [vmem:[%s3889_s4 + $0x110] sm:$0xff]  ;;  %v54_v20 = vld [vmem:[%s3889_s4 + $0xa8] sm:$0xff]  ;;  %v85_v21 = vld [vmem:[%s3889_s4 + $0x1a0] sm:$0xff] }
  0xb1   :  { %v349_v29 = vsel %vm345_vm8, %v344_v42, %v338_v56  ;;  %v346_v44 = vsel %vm345_vm8, %v342_v43, %v344_v42  ;;  %v347_v45 = vsel %vm345_vm8, %v340_v55, %v342_v43  ;;  %v52_v55 = vld [vmem:[%s3889_s4 + $0x98] sm:$0xff]  ;;  %v37_v48 = vld [vmem:[%s3889_s4 + $0x20] sm:$0xff]  ;;  %v38_v49 = vld [vmem:[%s3889_s4 + $0x28] sm:$0xff] }
  0xb2   :  { %v369_v51 = vmul.f32 %v3177_v11, %v349_v29  ;;  %v367_v56 = vmul.f32 %v3182_v0, %v347_v45  ;;  %v368_v57 = vmul.f32 %v3187_v1, %v346_v44  ;;  %v36_v42 = vld [vmem:[%s3889_s4 + $0x18] sm:$0xff]  ;;  %v3258_v12 = vpack.c.bf16 %v52_v55, %v51_v50  ;;  %v86_v29 = vld [vmem:[%s3889_s4 + $0x1a8] sm:$0xff]  ;;  %v55_v55 = vld [vmem:[%s3889_s4 + $0xb0] sm:$0xff] }
  0xb3   :  { %v68_v43 = vld [vmem:[%s3889_s4 + $0x118] sm:$0xff]  ;;  %v3286_v44 = vpack.c.bf16 %v36_v42, %v35_v40  ;;  %v3298_v50 = vpack.c.bf16 %v54_v20, %v53_v16  ;;  %v87_v60 = vld [vmem:[%s3889_s4 + $0x1b0] sm:$0xff]  ;;  %v45_v7 = vld [vmem:[%s3889_s4 + $0x60] sm:$0xff] }
  0xb4   :  { %2190 = vmatprep.subr.msk.mxu0 %vm418_vm3, %v367_v56  ;;  %2193 = vmatprep.subr.msk.mxu1 %vm418_vm3, %v369_v51  ;;  %v3288_v45 = vpack.c.bf16 %v68_v43, %v67_v28  ;;  %v3300_v51 = vpack.c.bf16 %v86_v29, %v85_v21  ;;  %v69_v56 = vld [vmem:[%s3889_s4 + $0x120] sm:$0xff]  ;;  %v39_v42 = vld [vmem:[%s3889_s4 + $0x30] sm:$0xff]  ;;  %v40_v28 = vld [vmem:[%s3889_s4 + $0x38] sm:$0xff]  ;;  %v3334_v43 = vpack.c.bf16 %v56_v59, %v55_v55 }
  0xb5   :  { %2191 = vmatpush1.msk.msra.mxu0 %vm418_vm3, %v366_v61  ;;  %2194 = vmatpush1.msk.msra.mxu1 %vm418_vm3, %v368_v57  ;;  %v70_v57 = vld [vmem:[%s3889_s4 + $0x128] sm:$0xff]  ;;  %v88_v61 = vld [vmem:[%s3889_s4 + $0x1b8] sm:$0xff]  ;;  %v71_v20 = vld [vmem:[%s3889_s4 + $0x130] sm:$0xff] }
  0xb6   :  { %2192 = vmatmul.mubr.msk.f32.vlgmr.msra.gmra.mrb[0].mxu0 %vm436_vm9, %v435_v62  ;;  %2195 = vmatmul.mubr.msk.f32.vlgmr.msra.gmra.mrb[0].mxu1 %vm436_vm9, %v435_v62  ;;  %v3322_v62 = vpack.c.bf16 %v38_v49, %v37_v48  ;;  %v3324_v40 = vpack.c.bf16 %v70_v57, %v69_v56  ;;  %v3336_v16 = vpack.c.bf16 %v88_v61, %v87_v60  ;;  %v72_v21 = vld [vmem:[%s3889_s4 + $0x138] sm:$0xff]  ;;  %v57_v29 = vld [vmem:[%s3889_s4 + $0xc0] sm:$0xff]  ;;  %v58_v48 = vld [vmem:[%s3889_s4 + $0xc8] sm:$0xff] }
  0xb7   :  { %2523 = vmatprep.subr.bf16.mxu0 %v3240_v63  ;;  %2555 = vmatprep.subr.bf16.mxu1 %v3242_v5  ;;  %v89_v49 = vld [vmem:[%s3889_s4 + $0x1c0] sm:$0xff]  ;;  %v90_v56 = vld [vmem:[%s3889_s4 + $0x1c8] sm:$0xff]  ;;  %v3358_v57 = vpack.c.bf16 %v40_v28, %v39_v42  ;;  %v3360_v55 = vpack.c.bf16 %v72_v21, %v71_v20  ;;  %v3370_v61 = vpack.c.bf16 %v58_v48, %v57_v29  ;;  %v59_v20 = vld [vmem:[%s3889_s4 + $0xd0] sm:$0xff] }
  0xb8   :  { %2525 = vmatpush3.bf16.msra.mxu0 %v3246_v9  ;;  %2557 = vmatpush3.bf16.msra.mxu1 %v3248_v35  ;;  %v41_v59 = vld [vmem:[%s3889_s4 + $0x40] sm:$0xff]  ;;  %v42_v60 = vld [vmem:[%s3889_s4 + $0x48] sm:$0xff]  ;;  %v3372_v4 = vpack.c.bf16 %v90_v56, %v89_v49  ;;  %v60_v21 = vld [vmem:[%s3889_s4 + $0xd8] sm:$0xff] }
  0xb9   :  { %2527 = vmatprep.subr.bf16.mxu0 %v3258_v12  ;;  %2559 = vmatprep.subr.bf16.mxu1 %v3260_v30  ;;  %v73_v42 = vld [vmem:[%s3889_s4 + $0x140] sm:$0xff]  ;;  %v74_v28 = vld [vmem:[%s3889_s4 + $0x148] sm:$0xff]  ;;  %v91_v29 = vld [vmem:[%s3889_s4 + $0x1d0] sm:$0xff]  ;;  %v3394_v49 = vpack.c.bf16 %v42_v60, %v41_v59  ;;  %v3406_v11 = vpack.c.bf16 %v60_v21, %v59_v20 }
  0xba   :  { %v92_v48 = vld [vmem:[%s3889_s4 + $0x1d8] sm:$0xff]  ;;  %v3396_v56 = vpack.c.bf16 %v74_v28, %v73_v42  ;;  %v75_v59 = vld [vmem:[%s3889_s4 + $0x150] sm:$0xff]  ;;  %v61_v42 = vld [vmem:[%s3889_s4 + $0xe0] sm:$0xff] }
  0xbb   :  { %v3408_v1 = vpack.c.bf16 %v92_v48, %v91_v29  ;;  %v76_v60 = vld [vmem:[%s3889_s4 + $0x158] sm:$0xff]  ;;  %v62_v28 = vld [vmem:[%s3889_s4 + $0xe8] sm:$0xff]  ;;  %v93_v20 = vld [vmem:[%s3889_s4 + $0x1e0] sm:$0xff]  ;;  %v3430_v29 = vpack.c.bf16 %v44_v3, %v43_v2 }
  0xbc   :  { %2529 = vmatpush3.bf16.msra.mxu0 %v3286_v44  ;;  %2561 = vmatpush3.bf16.msra.mxu1 %v3288_v45  ;;  %v94_v21 = vld [vmem:[%s3889_s4 + $0x1e8] sm:$0xff]  ;;  %v3432_v48 = vpack.c.bf16 %v76_v60, %v75_v59  ;;  %v3442_v15 = vpack.c.bf16 %v62_v28, %v61_v42  ;;  %v77_v2 = vld [vmem:[%s3889_s4 + $0x160] sm:$0xff]  ;;  %v63_v59 = vld [vmem:[%s3889_s4 + $0xf0] sm:$0xff] }
  0xbd   :  { %2531 = vmatprep.subr.bf16.mxu0 %v3298_v50  ;;  %2563 = vmatprep.subr.bf16.mxu1 %v3300_v51  ;;  %3967 = vst [vmem:[#allocation22_spill] sm:$0xff] %v3408_v1  ;;  %3968 = vst [vmem:[#allocation23_spill] sm:$0xff] %v3430_v29  ;;  %v46_v0 = vld [vmem:[%s3889_s4 + $0x68] sm:$0xff]  ;;  %v3444_v6 = vpack.c.bf16 %v94_v21, %v93_v20  ;;  %v64_v60 = vld [vmem:[%s3889_s4 + $0xf8] sm:$0xff] }
  0xbe   :  { %3969 = vst [vmem:[#allocation24_spill] sm:$0xff] %v3432_v48  ;;  %3970 = vst [vmem:[#allocation25_spill] sm:$0xff] %v3442_v15  ;;  %v78_v3 = vld [vmem:[%s3889_s4 + $0x168] sm:$0xff]  ;;  %v95_v42 = vld [vmem:[%s3889_s4 + $0x1f0] sm:$0xff]  ;;  %v3466_v20 = vpack.c.bf16 %v46_v0, %v45_v7  ;;  %v3472_v8 = vpack.c.bf16 %v64_v60, %v63_v59 }
  0xbf   :  { %3971 = vst [vmem:[#allocation26_spill] sm:$0xff] %v3444_v6  ;;  %v96_v28 = vld [vmem:[%s3889_s4 + $0x1f8] sm:$0xff]  ;;  %v3468_v21 = vpack.c.bf16 %v78_v3, %v77_v2  ;;  %v47_v7 = vld [vmem:[%s3889_s4 + $0x70] sm:$0xff] }
  0xc0   :  { %2533 = vmatpush3.bf16.msra.mxu0 %v3322_v62  ;;  %2565 = vmatpush3.bf16.msra.mxu1 %v3324_v40  ;;  %3972 = vst [vmem:[#allocation27_spill] sm:$0xff] %v3466_v20  ;;  %3974 = vst [vmem:[#allocation29_spill] sm:$0xff] %v3472_v8  ;;  %v3474_v52 = vpack.c.bf16 %v96_v28, %v95_v42  ;;  %v48_v0 = vld [vmem:[%s3889_s4 + $0x78] sm:$0xff]  ;;  %v79_v2 = vld [vmem:[%s3889_s4 + $0x170] sm:$0xff] }
  0xc1   :  { %2535 = vmatprep.subr.bf16.mxu0 %v3334_v43  ;;  %2567 = vmatprep.subr.bf16.mxu1 %v3336_v16  ;;  %3973 = vst [vmem:[#allocation28_spill] sm:$0xff] %v3468_v21  ;;  %v3489_v3 = vpack.c.bf16 %v48_v0, %v47_v7  ;;  %v80_v59 = vld [vmem:[%s3889_s4 + $0x178] sm:$0xff]  ;;  %v3978_v7 = vmov 0.0   ;;  %v2822_v0 = vmov 1983009808  }
  0xc2   :  { %3975 = vst [vmem:[#allocation30_spill] sm:$0xff] %v3474_v52  ;;  %v3494_v60 = vpack.c.bf16 %v80_v59, %v79_v2  ;;  %v738_v2 = vunpack.c.l.s4 %v2822_v0 }
  0xc3   :  { %3976 = vst [vmem:[#allocation31_spill] sm:$0xff] %v3489_v3 }
  0xc4   :  { %2537 = vmatpush3.bf16.msra.mxu0 %v3358_v57  ;;  %2569 = vmatpush3.bf16.msra.mxu1 %v3360_v55  ;;  %3977 = vst [vmem:[#allocation32_spill] sm:$0xff] %v3494_v60  ;;  %v739_v59 = vunpack.c.0.s8 %v738_v2  ;;  %v4001_v13 = vld [vmem:[#allocation22_spill] sm:$0xff] }
  0xc5   :  { %2539 = vmatprep.subr.bf16.mxu0 %v3370_v61  ;;  %2571 = vmatprep.subr.bf16.mxu1 %v3372_v4 }
  0xc6   :  { %v742_v22 = vsub.s32 %v739_v59, %v2942_v10 }
  0xc8   :  { %2541 = vmatpush3.bf16.msra.mxu0 %v3394_v49  ;;  %2573 = vmatpush3.bf16.msra.mxu1 %v3396_v56  ;;  %v3516_v19 = vrot.slane %v97_v39, %v742_v22  ;;  %v3518_v18 = vrot.slane %v736_v17, %v742_v22 }
  0xc9   :  { %2543 = vmatprep.subr.bf16.mxu0 %v3406_v11  ;;  %2575 = vmatprep.subr.bf16.mxu1 %v3408_v1 }
  0xca   :  { %3979 = vst [vmem:[#allocation33_spill] sm:$0xff] %v3516_v19  ;;  %3980 = vst [vmem:[#allocation34_spill] sm:$0xff] %v3518_v18  ;;  %v3522_v14 = vcombine.high %v3516_v19, %v3516_v19  ;;  %v3526_v58 = vcombine.high %v3518_v18, %v3518_v18 }
  0xcc   :  { %2545 = vmatpush3.bf16.msra.mxu0 %v3430_v29  ;;  %2577 = vmatpush3.bf16.msra.mxu1 %v3432_v48  ;;  %3981 = vst [vmem:[#allocation35_spill] sm:$0xff] %v3522_v14  ;;  %3982 = vst [vmem:[#allocation36_spill] sm:$0xff] %v3526_v58 }
  0xcd   :  { %2547 = vmatprep.subr.bf16.mxu0 %v3442_v15  ;;  %2579 = vmatprep.subr.bf16.mxu1 %v3444_v6 }
  0xd0   :  { %2549 = vmatpush3.bf16.msra.mxu0 %v3466_v20  ;;  %2581 = vmatpush3.bf16.msra.mxu1 %v3468_v21 }
  0xd1   :  { %2551 = vmatprep.subr.bf16.mxu0 %v3472_v8  ;;  %2583 = vmatprep.subr.bf16.mxu1 %v3474_v52 }
  0xd4   :  { %2553 = vmatpush3.bf16.msra.mxu0 %v3489_v3  ;;  %2585 = vmatpush3.bf16.msra.mxu1 %v3494_v60 }
  0xd5   :  { %2196 = vmatprep.subr.msk.mxu0 %vm757_vm10, %v3522_v14  ;;  %2199 = vmatprep.subr.msk.mxu1 %vm757_vm10, %v3526_v58 }
 0x189   :  { %v3498_v42 = vpop.f32.mrb[0].mxu0  ;;  %v3500_v28 = vpop.f32.mrb[0].mxu1 }
 0x18a   :  { %v3502_v36 = vpop.f32.mrb[1].mxu0  ;;  %v3504_v47 = vpop.f32.mrb[1].mxu1 }
 0x18b   :  { %658 = vmatprep.mubr.f32.mxu0 %v3502_v36  ;;  %728 = vmatprep.mubr.f32.mxu1 %v3504_v47 }
 0x18c   :  { %659 = vmatmul.mubr.f32.vlgmr.msra.gmra.mrb[2].mxu0 %v3498_v42  ;;  %729 = vmatmul.mubr.f32.vlgmr.msra.gmra.mrb[2].mxu1 %v3500_v28 }
 0x18d   :  { %830 = vmatprep.mubr.f32.mxu0 %v3978_v7  ;;  %901 = vmatprep.mubr.f32.mxu1 %v3978_v7 }
 0x18e   :  { %2197 = vmatpush1.msk.msra.mxu0 %vm757_vm10, %v3516_v19  ;;  %2200 = vmatpush1.msk.msra.mxu1 %vm757_vm10, %v3518_v18 }
 0x18f   :  { %2587 = vmatprep.subr.bf16.mxu0 %v3240_v63  ;;  %2619 = vmatprep.subr.bf16.mxu1 %v3242_v5 }
 0x25f   :  { %v2258_v10 = vpop.f32.mrb[2].mxu0  ;;  %v2293_v17 = vpop.f32.mrb[2].mxu1 }
 0x260   :  { %v2259_v22 = vpop.f32.mrb[3].mxu0  ;;  %v2294_v39 = vpop.f32.mrb[3].mxu1 }
 0x261   :  { %v2260_v0 = vadd.f32 %v2259_v22, %v2258_v10  ;;  %v2295_v2 = vadd.f32 %v2294_v39, %v2293_v17 }
 0x263   :  { %v731_v59 = vadd.f32 %v2295_v2, %v2260_v0 }
 0x265   :  { %v734_v53 = vmul.f32 0.00390625, %v731_v59 }
 0x267   :  { %2198 = vmatmul.mubr.msk.f32.vlgmr.msra.gmra.mrb[4].mxu0 %vm753_vm11, %v734_v53  ;;  %2201 = vmatmul.mubr.msk.f32.vlgmr.msra.gmra.mrb[4].mxu1 %vm753_vm11, %v734_v53 }
 0x268   :  { %2589 = vmatpush3.bf16.msra.mxu0 %v3246_v9  ;;  %2621 = vmatpush3.bf16.msra.mxu1 %v3248_v35 }
 0x269   :  { %2591 = vmatprep.subr.bf16.mxu0 %v3258_v12  ;;  %2623 = vmatprep.subr.bf16.mxu1 %v3260_v30 }
 0x26c   :  { %2593 = vmatpush3.bf16.msra.mxu0 %v3286_v44  ;;  %2625 = vmatpush3.bf16.msra.mxu1 %v3288_v45 }
 0x26d   :  { %2595 = vmatprep.subr.bf16.mxu0 %v3298_v50  ;;  %2627 = vmatprep.subr.bf16.mxu1 %v3300_v51 }
 0x270   :  { %2597 = vmatpush3.bf16.msra.mxu0 %v3322_v62  ;;  %2629 = vmatpush3.bf16.msra.mxu1 %v3324_v40 }
 0x271   :  { %2599 = vmatprep.subr.bf16.mxu0 %v3334_v43  ;;  %2631 = vmatprep.subr.bf16.mxu1 %v3336_v16 }
 0x274   :  { %2601 = vmatpush3.bf16.msra.mxu0 %v3358_v57  ;;  %2633 = vmatpush3.bf16.msra.mxu1 %v3360_v55 }
 0x275   :  { %2603 = vmatprep.subr.bf16.mxu0 %v3370_v61  ;;  %2635 = vmatprep.subr.bf16.mxu1 %v3372_v4 }
 0x278   :  { %2605 = vmatpush3.bf16.msra.mxu0 %v3394_v49  ;;  %2637 = vmatpush3.bf16.msra.mxu1 %v3396_v56 }
 0x279   :  { %2607 = vmatprep.subr.bf16.mxu0 %v3406_v11  ;;  %2639 = vmatprep.subr.bf16.mxu1 %v3408_v1 }
 0x27c   :  { %2609 = vmatpush3.bf16.msra.mxu0 %v3430_v29  ;;  %2641 = vmatpush3.bf16.msra.mxu1 %v3432_v48 }
 0x27d   :  { %2611 = vmatprep.subr.bf16.mxu0 %v3442_v15  ;;  %2643 = vmatprep.subr.bf16.mxu1 %v3444_v6 }
 0x280   :  { %2613 = vmatpush3.bf16.msra.mxu0 %v3466_v20  ;;  %2645 = vmatpush3.bf16.msra.mxu1 %v3468_v21 }
 0x281   :  { %2615 = vmatprep.subr.bf16.mxu0 %v3472_v8  ;;  %2647 = vmatprep.subr.bf16.mxu1 %v3474_v52 }
 0x284   :  { %2617 = vmatpush3.bf16.msra.mxu0 %v3489_v3  ;;  %2649 = vmatpush3.bf16.msra.mxu1 %v3494_v60 }
 0x285   :  { %2202 = vmatprep.subr.msk.mxu0 %vm757_vm10, %v3522_v14  ;;  %2205 = vmatprep.subr.msk.mxu1 %vm757_vm10, %v3526_v58 }
 0x33a   :  { %v832_v53 = vpop.f32.mrb[4].mxu0  ;;  %v903_v10 = vpop.f32.mrb[4].mxu1 }
 0x33b   :  { %v908_v17 = vsub.f32 %v3498_v42, %v832_v53  ;;  %v910_v22 = vsub.f32 %v3500_v28, %v903_v10  ;;  %v834_v39 = vpop.f32.mrb[5].mxu0  ;;  %v905_v0 = vpop.f32.mrb[5].mxu1 }
 0x33c   :  { %v909_v2 = vsub.f32 %v3502_v36, %v834_v39  ;;  %v911_v59 = vsub.f32 %v3504_v47, %v905_v0 }
 0x33d   :  { %v912_v52 = vmul.f32 %v908_v17, %v908_v17  ;;  %v914_v8 = vmul.f32 %v910_v22, %v910_v22 }
 0x33e   :  { %v913_v3 = vmul.f32 %v909_v2, %v909_v2  ;;  %v915_v60 = vmul.f32 %v911_v59, %v911_v59 }
 0x340   :  { %980 = vmatprep.mubr.f32.mxu0 %v913_v3  ;;  %1050 = vmatprep.mubr.f32.mxu1 %v915_v60 }
 0x341   :  { %981 = vmatmul.mubr.f32.vlgmr.msra.gmra.mrb[6].mxu0 %v912_v52  ;;  %1051 = vmatmul.mubr.f32.vlgmr.msra.gmra.mrb[6].mxu1 %v914_v8 }
 0x342   :  { %2203 = vmatpush1.msk.msra.mxu0 %vm757_vm10, %v3516_v19  ;;  %1126 = vmatprep.mubr.f32.mxu0 %v3978_v7 }
 0x343   :  { %2206 = vmatpush1.msk.msra.mxu1 %vm757_vm10, %v3518_v18  ;;  %1197 = vmatprep.mubr.f32.mxu1 %v3978_v7 }
 0x414   :  { %v2328_v36 = vpop.f32.mrb[6].mxu0  ;;  %v2363_v47 = vpop.f32.mrb[6].mxu1 }
 0x415   :  { %v2329_v42 = vpop.f32.mrb[7].mxu0  ;;  %v2364_v28 = vpop.f32.mrb[7].mxu1 }
 0x416   :  { %v2330_v53 = vadd.f32 %v2329_v42, %v2328_v36  ;;  %v2365_v10 = vadd.f32 %v2364_v28, %v2363_v47 }
 0x418   :  { %v1053_v3 = vadd.f32 %v2365_v10, %v2330_v53 }
 0x41a   :  { %v1056_v60 = vmul.f32 0.00390625, %v1053_v3 }
 0x41c   :  { %v1057_v52 = vadd.f32 1e-05, %v1056_v60 }
 0x41e   :  { %2807 = vrsqrt.f32 %v1057_v52 }
 0x428   :  { %v2808_v8 = vpop.eup %2807 }
 0x429   :  { %2204 = vmatmul.mubr.msk.f32.vlgmr.msra.gmra.mrb[8].mxu0 %vm753_vm11, %v2808_v8  ;;  %2207 = vmatmul.mubr.msk.f32.vlgmr.msra.gmra.mrb[8].mxu1 %vm753_vm11, %v2808_v8 }
 0x42a   :  { %1492 = vmatprep.mubr.f32.mxu0 %v3978_v7  ;;  %1563 = vmatprep.mubr.f32.mxu1 %v3978_v7 }
 0x4fc   :  { %v1128_v39 = vpop.f32.mrb[8].mxu0  ;;  %v1199_v0 = vpop.f32.mrb[8].mxu1 }
 0x4fd   :  { %v1204_v18 = vmul.f32 %v1128_v39, %v908_v17  ;;  %v1206_v19 = vmul.f32 %v1199_v0, %v910_v22  ;;  %v1130_v58 = vpop.f32.mrb[9].mxu0  ;;  %v1201_v36 = vpop.f32.mrb[9].mxu1 }
 0x4fe   :  { %v1205_v47 = vmul.f32 %v1130_v58, %v909_v2  ;;  %v1207_v42 = vmul.f32 %v1201_v36, %v911_v59 }
 0x4ff   :  { %vm1208_vm12 = vcmp.ge.f32.partialorder %v1204_v18, 0.0  ;;  %v1212_v28 = vmul.f32 0.01, %v1204_v18  ;;  %v1214_v3 = vmul.f32 0.01, %v1206_v19  ;;  %vm1210_vm14 = vcmp.ge.f32.partialorder %v1206_v19, 0.0 }
 0x500   :  { %vm1209_vm13 = vcmp.ge.f32.partialorder %v1205_v47, 0.0  ;;  %v1213_v53 = vmul.f32 0.01, %v1205_v47  ;;  %v1215_v52 = vmul.f32 0.01, %v1207_v42  ;;  %vm1211_vm15 = vcmp.ge.f32.partialorder %v1207_v42, 0.0 }
 0x501   :  { %v3588_v10 = vsel %vm1208_vm12, %v1204_v18, %v1212_v28  ;;  %v3596_v58 = vsel %vm1210_vm14, %v1206_v19, %v1214_v3 }
 0x502   :  { %v3590_v60 = vsel %vm1209_vm13, %v1205_v47, %v1213_v53  ;;  %1236 = vrot.lane.b32.xlu0 %v3588_v10, %s2813_s25  ;;  %v3598_v17 = vsel %vm1211_vm15, %v1207_v42, %v1215_v52 }
 0x503   :  { %1238 = vrot.lane.b32.xlu1 %v3590_v60, %s2813_s25 }
 0x506   :  { %1240 = vrot.lane.b32.xlu0 %v3596_v58, %s2813_s25 }
 0x507   :  { %1242 = vrot.lane.b32.xlu1 %v3598_v17, %s2813_s25 }
 0x50a   :  { %1268 = vrot.lane.b32.xlu0 %v3588_v10, %s2814_s26 }
 0x50b   :  { %1270 = vrot.lane.b32.xlu1 %v3590_v60, %s2814_s26 }
 0x50e   :  { %1272 = vrot.lane.b32.xlu0 %v3596_v58, %s2814_s26 }
 0x50f   :  { %1274 = vrot.lane.b32.xlu1 %v3598_v17, %s2814_s26 }
 0x512   :  { %1220 = vrot.lane.b32.xlu0 %v3588_v10, %s2815_s27 }
 0x513   :  { %1222 = vrot.lane.b32.xlu1 %v3590_v60, %s2815_s27 }
 0x516   :  { %1224 = vrot.lane.b32.xlu0 %v3596_v58, %s2815_s27 }
 0x517   :  { %1226 = vrot.lane.b32.xlu1 %v3598_v17, %s2815_s27 }
 0x51a   :  { %1252 = vrot.lane.b32.xlu0 %v3588_v10, %s2816_s28 }
 0x51b   :  { %1254 = vrot.lane.b32.xlu1 %v3590_v60, %s2816_s28 }
 0x51e   :  { %1256 = vrot.lane.b32.xlu0 %v3596_v58, %s2816_s28 }
 0x51f   :  { %1258 = vrot.lane.b32.xlu1 %v3598_v17, %s2816_s28 }
 0x522   :  { %1284 = vrot.lane.b32.xlu0 %v3588_v10, %s2817_s29 }
 0x523   :  { %1286 = vrot.lane.b32.xlu1 %v3590_v60, %s2817_s29 }
 0x526   :  { %1288 = vrot.lane.b32.xlu0 %v3596_v58, %s2817_s29 }
 0x527   :  { %1290 = vrot.lane.b32.xlu1 %v3598_v17, %s2817_s29 }
 0x52a   :  { %1316 = vrot.lane.b32.xlu0 %v3588_v10, %s2818_s30 }
 0x52b   :  { %1318 = vrot.lane.b32.xlu1 %v3590_v60, %s2818_s30 }
 0x52e   :  { %1320 = vrot.lane.b32.xlu0 %v3596_v58, %s2818_s30 }
 0x52f   :  { %1322 = vrot.lane.b32.xlu1 %v3598_v17, %s2818_s30 }
 0x532   :  { %1300 = vrot.lane.b32.xlu0 %v3588_v10, %s2819_s7 }
 0x533   :  { %1302 = vrot.lane.b32.xlu1 %v3590_v60, %s2819_s7 }
 0x536   :  { %1304 = vrot.lane.b32.xlu0 %v3596_v58, %s2819_s7 }
 0x537   :  { %1306 = vrot.lane.b32.xlu1 %v3598_v17, %s2819_s7 }
 0x53a   :  { %1332 = vrot.lane.b32.xlu0 %v3588_v10, %s2821_s8 }
 0x53b   :  { %1334 = vrot.lane.b32.xlu1 %v3590_v60, %s2821_s8 }
 0x53e   :  { %1336 = vrot.lane.b32.xlu0 %v3596_v58, %s2821_s8 }
 0x53f   :  { %1338 = vrot.lane.b32.xlu1 %v3598_v17, %s2821_s8 }
 0x574   :  { %v1237_v18 = vpop.permute.xlu0 %1236 }
 0x575   :  { %v1239_v19 = vpop.permute.xlu1 %1238 }
 0x576   :  { %v1246_v42 = vsel %vm147_vm0, %v1237_v18, %v1239_v19 }
 0x577   :  { %v1249_v7 = vmul.f32 %v1246_v42, %v2979_v25 }
 0x578   :  { %v1241_v22 = vpop.permute.xlu0 %1240 }
 0x579   :  { %v1243_v2 = vpop.permute.xlu1 %1242  ;;  %v1245_v6 = vsel %vm147_vm0, %v1239_v19, %v1241_v22  ;;  %v1353_v1 = vrot.slane %v1249_v7, 4 }
 0x57a   :  { %v1247_v28 = vsel %vm147_vm0, %v1243_v2, %v1237_v18  ;;  %v1244_v53 = vsel %vm147_vm0, %v1241_v22, %v1243_v2  ;;  %v1250_v19 = vmul.f32 %v1245_v6, %v2982_v26 }
 0x57b   :  { %v1248_v18 = vmul.f32 %v1247_v28, %v2971_v23  ;;  %v1251_v2 = vmul.f32 %v1244_v53, %v2974_v24 }
 0x57c   :  { %v1269_v59 = vpop.permute.xlu0 %1268 }
 0x57d   :  { %v1271_v8 = vpop.permute.xlu1 %1270  ;;  %v1352_v22 = vrot.slane %v1248_v18, 4  ;;  %v1355_v6 = vrot.slane %v1251_v2, 4  ;;  %v1354_v18 = vrot.slane %v1250_v19, 4 }
 0x57e   :  { %v1278_v3 = vsel %vm213_vm1, %v1269_v59, %v1271_v8 }
 0x57f   :  { %v1281_v15 = vmul.f32 %v1278_v3, %v2985_v27 }
 0x580   :  { %v1273_v39 = vpop.permute.xlu0 %1272 }
 0x581   :  { %v1275_v0 = vpop.permute.xlu1 %1274  ;;  %v1277_v14 = vsel %vm213_vm1, %v1271_v8, %v1273_v39 }
 0x582   :  { %v1282_v48 = vmul.f32 %v1277_v14, %v2992_v32  ;;  %v1276_v25 = vsel %vm213_vm1, %v1273_v39, %v1275_v0  ;;  %v1279_v8 = vsel %vm213_vm1, %v1275_v0, %v1269_v59  ;;  %v1365_v59 = vrot.slane %v1281_v15, 4 }
 0x584   :  { %v1221_v36 = vpop.permute.xlu0 %1220  ;;  %v1366_v7 = vrot.slane %v1282_v48, 4 }
 0x585   :  { %v1223_v47 = vpop.permute.xlu1 %1222 }
 0x586   :  { %v1230_v21 = vsel %vm114_vm2, %v1221_v36, %v1223_v47 }
 0x587   :  { %v1233_v42 = vmul.f32 %v1230_v21, %v2998_v34  ;;  %v1280_v34 = vmul.f32 %v1279_v8, %v2989_v31  ;;  %v1283_v21 = vmul.f32 %v1276_v25, %v2995_v33 }
 0x588   :  { %v1225_v52 = vpop.permute.xlu0 %1224 }
 0x589   :  { %v1227_v20 = vpop.permute.xlu1 %1226  ;;  %v1229_v23 = vsel %vm114_vm2, %v1223_v47, %v1225_v52  ;;  %v1397_v47 = vsel %vm418_vm3, %v1233_v42, %v1353_v1  ;;  %v1364_v1 = vrot.slane %v1280_v34, 4  ;;  %v1367_v53 = vrot.slane %v1283_v21, 4 }
 0x58a   :  { %v1228_v27 = vsel %vm114_vm2, %v1225_v52, %v1227_v20  ;;  %v1231_v32 = vsel %vm114_vm2, %v1227_v20, %v1221_v36  ;;  %v1234_v39 = vmul.f32 %v1229_v23, %v3008_v38 }
 0x58b   :  { %v1232_v28 = vmul.f32 %v1231_v32, %v3005_v37  ;;  %v1235_v20 = vmul.f32 %v1228_v27, %v3015_v41  ;;  %v3983_v37 = vld [vmem:[#allocation4_spill] sm:$0xff]  ;;  %v3984_v41 = vld [vmem:[#allocation5_spill] sm:$0xff] }
 0x58c   :  { %v1253_v29 = vpop.permute.xlu0 %1252 }
 0x58d   :  { %v1255_v24 = vpop.permute.xlu1 %1254  ;;  %v1399_v23 = vsel %vm418_vm3, %v1235_v20, %v1355_v6 }
 0x58e   :  { %v1262_v14 = vsel %vm180_vm4, %v1253_v29, %v1255_v24 }
 0x58f   :  { %v1265_v26 = vmul.f32 %v1262_v14, %v3023_v46 }
 0x590   :  { %v1257_v0 = vpop.permute.xlu0 %1256 }
 0x591   :  { %v1261_v15 = vsel %vm180_vm4, %v1255_v24, %v1257_v0  ;;  %v1259_v36 = vpop.permute.xlu1 %1258  ;;  %v1401_v31 = vsel %vm418_vm3, %v1265_v26, %v1365_v59  ;;  %v1398_v24 = vsel %vm418_vm3, %v1234_v39, %v1354_v18 }
 0x592   :  { %v1266_v33 = vmul.f32 %v1261_v15, %v3037_v54  ;;  %v1260_v46 = vsel %vm180_vm4, %v1257_v0, %v1259_v36  ;;  %v1263_v38 = vsel %vm180_vm4, %v1259_v36, %v1253_v29  ;;  %v2650_v48 = vpack.c.bf16 %v1401_v31, %v1397_v47  ;;  %v3985_v15 = vld [vmem:[#allocation6_spill] sm:$0xff]  ;;  %v3986_v31 = vld [vmem:[#allocation8_spill] sm:$0xff] }
 0x593   :  { %v1264_v3 = vmul.f32 %v1263_v38, %v3983_v37  ;;  %v1267_v52 = vmul.f32 %v1260_v46, %v3984_v41  ;;  %v1396_v54 = vsel %vm418_vm3, %v1232_v28, %v1352_v22  ;;  %v3987_v46 = vld [vmem:[#allocation9_spill] sm:$0xff] }
 0x594   :  { %v1402_v2 = vsel %vm418_vm3, %v1266_v33, %v1366_v7  ;;  %v1285_v25 = vpop.permute.xlu0 %1284  ;;  %2651 = vmatprep.subr.bf16.mxu0 %v2650_v48 }
 0x595   :  { %v1400_v8 = vsel %vm418_vm3, %v1264_v3, %v1364_v1  ;;  %v1287_v42 = vpop.permute.xlu1 %1286  ;;  %v1403_v29 = vsel %vm418_vm3, %v1267_v52, %v1367_v53  ;;  %v2660_v14 = vpack.c.bf16 %v1402_v2, %v1398_v24  ;;  %v3988_v53 = vld [vmem:[#allocation7_spill] sm:$0xff]  ;;  %v3989_v3 = vld [vmem:[#allocation10_spill] sm:$0xff]  ;;  %v3990_v52 = vld [vmem:[#allocation12_spill] sm:$0xff] }
 0x596   :  { %v2652_v27 = vpack.c.bf16 %v1400_v8, %v1396_v54  ;;  %v2658_v32 = vpack.c.bf16 %v1403_v29, %v1399_v23  ;;  %v1294_v26 = vsel %vm246_vm5, %v1285_v25, %v1287_v42  ;;  %v3993_v29 = vld [vmem:[#allocation14_spill] sm:$0xff] }
 0x597   :  { %v1296_v36 = vmul.f32 %v1294_v26, %v3985_v15  ;;  %v3995_v15 = vld [vmem:[#allocation17_spill] sm:$0xff] }
 0x598   :  { %v1289_v59 = vpop.permute.xlu0 %1288  ;;  %2653 = vmatpush1.bf16.msra.mxu0 %v2652_v27  ;;  %2659 = vmatprep.subr.bf16.mxu1 %v2658_v32 }
 0x599   :  { %2661 = vmatpush1.bf16.msra.mxu1 %v2660_v14  ;;  %v1291_v19 = vpop.permute.xlu1 %1290  ;;  %v1293_v6 = vsel %vm246_vm5, %v1287_v42, %v1289_v59  ;;  %v3992_v42 = vld [vmem:[#allocation11_spill] sm:$0xff]  ;;  %v1376_v27 = vrot.slane %v1296_v36, 4 }
 0x59a   :  { %v1292_v7 = vsel %vm246_vm5, %v1289_v59, %v1291_v19  ;;  %v1295_v0 = vsel %vm246_vm5, %v1291_v19, %v1285_v25  ;;  %v1297_v33 = vmul.f32 %v1293_v6, %v3986_v31  ;;  %v3991_v25 = vld [vmem:[#allocation13_spill] sm:$0xff]  ;;  %v3996_v31 = vld [vmem:[#allocation15_spill] sm:$0xff] }
 0x59b   :  { %v1298_v38 = vmul.f32 %v1292_v7, %v3987_v46  ;;  %v1299_v37 = vmul.f32 %v1295_v0, %v3988_v53  ;;  %v3994_v7 = vld [vmem:[#allocation16_spill] sm:$0xff]  ;;  %v1404_v46 = vsel %vm418_vm3, %v3588_v10, %v1376_v27 }
 0x59c   :  { %v1317_v34 = vpop.permute.xlu0 %1316  ;;  %v1377_v32 = vrot.slane %v1297_v33, 4 }
 0x59d   :  { %v1319_v21 = vpop.permute.xlu1 %1318  ;;  %v1378_v14 = vrot.slane %v1298_v38, 4  ;;  %v1379_v19 = vrot.slane %v1299_v37, 4 }
 0x59e   :  { %v1326_v47 = vsel %vm312_vm6, %v1317_v34, %v1319_v21  ;;  %v1405_v53 = vsel %vm418_vm3, %v3590_v60, %v1377_v32  ;;  %v3999_v32 = vld [vmem:[#allocation21_spill] sm:$0xff] }
 0x59f   :  { %v1328_v41 = vmul.f32 %v1326_v47, %v3989_v3  ;;  %v1406_v38 = vsel %vm418_vm3, %v3596_v58, %v1378_v14 }
 0x5a0   :  { %v1321_v22 = vpop.permute.xlu0 %1320 }
 0x5a1   :  { %v1323_v39 = vpop.permute.xlu1 %1322  ;;  %v1325_v28 = vsel %vm312_vm6, %v1319_v21, %v1321_v22 }
 0x5a2   :  { %v1324_v20 = vsel %vm312_vm6, %v1321_v22, %v1323_v39  ;;  %v1327_v48 = vsel %vm312_vm6, %v1323_v39, %v1317_v34  ;;  %v1329_v18 = vmul.f32 %v1325_v28, %v3990_v52  ;;  %v1388_v34 = vrot.slane %v1328_v41, 4 }
 0x5a3   :  { %v1330_v54 = vmul.f32 %v1324_v20, %v3991_v25  ;;  %v1331_v23 = vmul.f32 %v1327_v48, %v3992_v42  ;;  %v1407_v52 = vsel %vm418_vm3, %v3598_v17, %v1379_v19  ;;  %v3997_v42 = vld [vmem:[#allocation20_spill] sm:$0xff] }
 0x5a4   :  { %v1301_v1 = vpop.permute.xlu0 %1300  ;;  %v1389_v21 = vrot.slane %v1329_v18, 4 }
 0x5a5   :  { %v1303_v2 = vpop.permute.xlu1 %1302  ;;  %v1390_v6 = vrot.slane %v1330_v54, 4  ;;  %v1391_v28 = vrot.slane %v1331_v23, 4 }
 0x5a6   :  { %v1310_v8 = vsel %vm279_vm7, %v1301_v1, %v1303_v2 }
 0x5a7   :  { %v1312_v24 = vmul.f32 %v1310_v8, %v3993_v29 }
 0x5a8   :  { %v1305_v59 = vpop.permute.xlu0 %1304 }
 0x5a9   :  { %v1309_v22 = vsel %vm279_vm7, %v1303_v2, %v1305_v59  ;;  %v1307_v26 = vpop.permute.xlu1 %1306  ;;  %v1408_v20 = vsel %vm418_vm3, %v1312_v24, %v1388_v34  ;;  %v3998_v24 = vld [vmem:[#allocation18_spill] sm:$0xff] }
 0x5aa   :  { %v1313_v39 = vmul.f32 %v1309_v22, %v3994_v7  ;;  %v1308_v0 = vsel %vm279_vm7, %v1305_v59, %v1307_v26  ;;  %v1311_v47 = vsel %vm279_vm7, %v1307_v26, %v1301_v1  ;;  %v2656_v2 = vpack.c.bf16 %v1408_v20, %v1404_v46  ;;  %v4000_v59 = vld [vmem:[#allocation19_spill] sm:$0xff]  ;;  %v1412_v34 = vld [vmem:[%s3892_s2] sm:$0xf]  ;;  %v4003_v22 = vld [vmem:[#allocation24_spill] sm:$0xff] }
 0x5ab   :  { %v1314_v36 = vmul.f32 %v1308_v0, %v3995_v15  ;;  %v1315_v33 = vmul.f32 %v1311_v47, %v3996_v31  ;;  %v4004_v26 = vld [vmem:[#allocation25_spill] sm:$0xff]  ;;  %v4006_v7 = vld [vmem:[#allocation27_spill] sm:$0xff]  ;;  %v4009_v47 = vld [vmem:[#allocation30_spill] sm:$0xff] }
 0x5ac   :  { %v1333_v48 = vpop.permute.xlu0 %1332  ;;  %v1409_v37 = vsel %vm418_vm3, %v1313_v39, %v1389_v21  ;;  %v4002_v21 = vld [vmem:[#allocation23_spill] sm:$0xff]  ;;  %v4007_v39 = vld [vmem:[#allocation28_spill] sm:$0xff]  ;;  %v4008_v0 = vld [vmem:[#allocation29_spill] sm:$0xff] }
 0x5ad   :  { %v1410_v1 = vsel %vm418_vm3, %v1314_v36, %v1390_v6  ;;  %v1335_v3 = vpop.permute.xlu1 %1334  ;;  %v2654_v41 = vpack.c.bf16 %v1409_v37, %v1405_v53  ;;  %v1411_v18 = vsel %vm418_vm3, %v1315_v33, %v1391_v28  ;;  %v4005_v6 = vld [vmem:[#allocation26_spill] sm:$0xff]  ;;  %v4010_v28 = vld [vmem:[#allocation31_spill] sm:$0xff]  ;;  %v4011_v20 = vld [vmem:[#allocation32_spill] sm:$0xff]  ;;  %v4016_v37 = vmov 0.0  }
 0x5ae   :  { %v2662_v10 = vpack.c.bf16 %v1411_v18, %v1407_v52  ;;  %v2664_v25 = vpack.c.bf16 %v1410_v1, %v1406_v38  ;;  %v1342_v58 = vsel %vm345_vm8, %v1333_v48, %v1335_v3  ;;  %v4012_v15 = vld [vmem:[#allocation35_spill] sm:$0xff]  ;;  %v4013_v36 = vld [vmem:[#allocation36_spill] sm:$0xff]  ;;  %v4015_v53 = vld [vmem:[#allocation34_spill] sm:$0xff] }
 0x5af   :  { %2655 = vmatprep.subr.bf16.mxu0 %v2654_v41  ;;  %v1344_v27 = vmul.f32 %v3998_v24, %v1342_v58 }
 0x5b0   :  { %v1337_v54 = vpop.permute.xlu0 %1336  ;;  %2657 = vmatpush1.bf16.msra.mxu0 %v2656_v2  ;;  %2663 = vmatprep.subr.bf16.mxu1 %v2662_v10 }
 0x5b1   :  { %v1341_v60 = vsel %vm345_vm8, %v1335_v3, %v1337_v54  ;;  %2665 = vmatpush1.bf16.msra.mxu1 %v2664_v25  ;;  %v1339_v8 = vpop.permute.xlu1 %1338 }
 0x5b2   :  { %v1345_v23 = vmul.f32 %v3997_v42, %v1341_v60  ;;  %v1340_v17 = vsel %vm345_vm8, %v1337_v54, %v1339_v8  ;;  %v1343_v29 = vsel %vm345_vm8, %v1339_v8, %v1333_v48  ;;  %v4014_v48 = vld [vmem:[#allocation33_spill] sm:$0xff] }
 0x5b3   :  { %v1346_v14 = vmul.f32 %v3999_v32, %v1340_v17  ;;  %v1347_v19 = vmul.f32 %v4000_v59, %v1343_v29 }
 0x5b4   :  { %2208 = vmatprep.subr.msk.mxu0 %vm418_vm3, %v1345_v23 }
 0x5b5   :  { %2209 = vmatpush1.msk.msra.mxu0 %vm418_vm3, %v1344_v27  ;;  %2211 = vmatprep.subr.msk.mxu1 %vm418_vm3, %v1347_v19  ;;  %v2811_v27 = vld [vmem:[%s3887_s0] sm:$0xff]  ;;  %v4017_v19 = vld [vmem:[#allocation3_spill] sm:$0xff] }
 0x5b6   :  { %2210 = vmatmul.mubr.msk.f32.vlgmr.msra.gmra.mrb[10].mxu0 %vm436_vm9, %v1412_v34  ;;  %2212 = vmatpush1.msk.msra.mxu1 %vm418_vm3, %v1346_v14  ;;  %v2812_v14 = vld [vmem:[%s3887_s0 + $0x8] sm:$0xff] }
 0x5b7   :  { %2213 = vmatmul.mubr.msk.f32.vlgmr.msra.gmra.mrb[10].mxu1 %vm436_vm9, %v1412_v34  ;;  %2667 = vmatprep.subr.bf16.mxu0 %v3240_v63 }
 0x5b8   :  { %2669 = vmatpush3.bf16.msra.mxu0 %v3246_v9  ;;  %2699 = vmatprep.subr.bf16.mxu1 %v3242_v5 }
 0x5b9   :  { %2701 = vmatpush3.bf16.msra.mxu1 %v3248_v35  ;;  %2671 = vmatprep.subr.bf16.mxu0 %v3258_v12 }
 0x5ba   :  { %2703 = vmatprep.subr.bf16.mxu1 %v3260_v30 }
 0x5bc   :  { %2673 = vmatpush3.bf16.msra.mxu0 %v3286_v44 }
 0x5bd   :  { %2705 = vmatpush3.bf16.msra.mxu1 %v3288_v45  ;;  %2675 = vmatprep.subr.bf16.mxu0 %v3298_v50 }
 0x5be   :  { %2707 = vmatprep.subr.bf16.mxu1 %v3300_v51 }
 0x5c0   :  { %2677 = vmatpush3.bf16.msra.mxu0 %v3322_v62 }
 0x5c1   :  { %2709 = vmatpush3.bf16.msra.mxu1 %v3324_v40  ;;  %2679 = vmatprep.subr.bf16.mxu0 %v3334_v43 }
 0x5c2   :  { %2711 = vmatprep.subr.bf16.mxu1 %v3336_v16 }
 0x5c4   :  { %2681 = vmatpush3.bf16.msra.mxu0 %v3358_v57 }
 0x5c5   :  { %2713 = vmatpush3.bf16.msra.mxu1 %v3360_v55  ;;  %2683 = vmatprep.subr.bf16.mxu0 %v3370_v61 }
 0x5c6   :  { %2715 = vmatprep.subr.bf16.mxu1 %v3372_v4 }
 0x5c8   :  { %2685 = vmatpush3.bf16.msra.mxu0 %v3394_v49 }
 0x5c9   :  { %2717 = vmatpush3.bf16.msra.mxu1 %v3396_v56  ;;  %2687 = vmatprep.subr.bf16.mxu0 %v3406_v11 }
 0x5ca   :  { %2719 = vmatprep.subr.bf16.mxu1 %v4001_v13 }
 0x5cc   :  { %2689 = vmatpush3.bf16.msra.mxu0 %v4002_v21 }
 0x5cd   :  { %2721 = vmatpush3.bf16.msra.mxu1 %v4003_v22  ;;  %2691 = vmatprep.subr.bf16.mxu0 %v4004_v26 }
 0x5ce   :  { %2723 = vmatprep.subr.bf16.mxu1 %v4005_v6 }
 0x5d0   :  { %2693 = vmatpush3.bf16.msra.mxu0 %v4006_v7 }
 0x5d1   :  { %2725 = vmatpush3.bf16.msra.mxu1 %v4007_v39  ;;  %2695 = vmatprep.subr.bf16.mxu0 %v4008_v0 }
 0x5d2   :  { %2727 = vmatprep.subr.bf16.mxu1 %v4009_v47 }
 0x5d4   :  { %2697 = vmatpush3.bf16.msra.mxu0 %v4010_v28 }
 0x5d5   :  { %2729 = vmatpush3.bf16.msra.mxu1 %v4011_v20  ;;  %2214 = vmatprep.subr.msk.mxu0 %vm757_vm10, %v4012_v15 }
 0x5d6   :  { %2217 = vmatprep.subr.msk.mxu1 %vm757_vm10, %v4013_v36 }
 0x689   :  { %v1494_v31 = vpop.f32.mrb[10].mxu0 }
 0x68a   :  { %v1496_v33 = vpop.f32.mrb[11].mxu0  ;;  %v1565_v46 = vpop.f32.mrb[10].mxu1 }
 0x68b   :  { %v1567_v38 = vpop.f32.mrb[11].mxu1  ;;  %1634 = vmatprep.mubr.f32.mxu0 %v1496_v33 }
 0x68c   :  { %1635 = vmatmul.mubr.f32.vlgmr.msra.gmra.mrb[12].mxu0 %v1494_v31  ;;  %1704 = vmatprep.mubr.f32.mxu1 %v1567_v38 }
 0x68d   :  { %1705 = vmatmul.mubr.f32.vlgmr.msra.gmra.mrb[12].mxu1 %v1565_v46  ;;  %2215 = vmatpush1.msk.msra.mxu0 %vm757_vm10, %v4014_v48 }
 0x68e   :  { %2218 = vmatpush1.msk.msra.mxu1 %vm757_vm10, %v4015_v53  ;;  %1778 = vmatprep.mubr.f32.mxu0 %v4016_v37 }
 0x68f   :  { %1849 = vmatprep.mubr.f32.mxu1 %v4016_v37  ;;  %2731 = vmatprep.subr.bf16.mxu0 %v3240_v63 }
 0x690   :  { %2763 = vmatprep.subr.bf16.mxu1 %v3242_v5 }
 0x75f   :  { %v2398_v1 = vpop.f32.mrb[12].mxu0 }
 0x760   :  { %v2399_v3 = vpop.f32.mrb[13].mxu0  ;;  %v2433_v41 = vpop.f32.mrb[12].mxu1 }
 0x761   :  { %v2400_v52 = vadd.f32 %v2399_v3, %v2398_v1  ;;  %v2434_v18 = vpop.f32.mrb[13].mxu1 }
 0x762   :  { %v2435_v2 = vadd.f32 %v2434_v18, %v2433_v41 }
 0x764   :  { %v1707_v10 = vadd.f32 %v2435_v2, %v2400_v52 }
 0x766   :  { %v1710_v25 = vmul.f32 0.00390625, %v1707_v10 }
 0x768   :  { %2216 = vmatmul.mubr.msk.f32.vlgmr.msra.gmra.mrb[14].mxu0 %vm753_vm11, %v1710_v25  ;;  %2219 = vmatmul.mubr.msk.f32.vlgmr.msra.gmra.mrb[14].mxu1 %vm753_vm11, %v1710_v25 }
 0x769   :  { %2733 = vmatpush3.bf16.msra.mxu0 %v3246_v9  ;;  %2765 = vmatpush3.bf16.msra.mxu1 %v3248_v35 }
 0x76a   :  { %2735 = vmatprep.subr.bf16.mxu0 %v3258_v12  ;;  %2767 = vmatprep.subr.bf16.mxu1 %v3260_v30 }
 0x76d   :  { %2737 = vmatpush3.bf16.msra.mxu0 %v3286_v44  ;;  %2769 = vmatpush3.bf16.msra.mxu1 %v3288_v45 }
 0x76e   :  { %2739 = vmatprep.subr.bf16.mxu0 %v3298_v50  ;;  %2771 = vmatprep.subr.bf16.mxu1 %v3300_v51 }
 0x771   :  { %2741 = vmatpush3.bf16.msra.mxu0 %v3322_v62  ;;  %2773 = vmatpush3.bf16.msra.mxu1 %v3324_v40 }
 0x772   :  { %2743 = vmatprep.subr.bf16.mxu0 %v3334_v43  ;;  %2775 = vmatprep.subr.bf16.mxu1 %v3336_v16 }
 0x775   :  { %2745 = vmatpush3.bf16.msra.mxu0 %v3358_v57  ;;  %2777 = vmatpush3.bf16.msra.mxu1 %v3360_v55 }
 0x776   :  { %2747 = vmatprep.subr.bf16.mxu0 %v3370_v61  ;;  %2779 = vmatprep.subr.bf16.mxu1 %v3372_v4 }
 0x779   :  { %2749 = vmatpush3.bf16.msra.mxu0 %v3394_v49  ;;  %2781 = vmatpush3.bf16.msra.mxu1 %v3396_v56 }
 0x77a   :  { %2751 = vmatprep.subr.bf16.mxu0 %v3406_v11  ;;  %2783 = vmatprep.subr.bf16.mxu1 %v4001_v13  ;;  %v4018_v13 = vld [vmem:[#allocation2_spill] sm:$0xff] }
 0x77d   :  { %2753 = vmatpush3.bf16.msra.mxu0 %v4002_v21  ;;  %2785 = vmatpush3.bf16.msra.mxu1 %v4003_v22 }
 0x77e   :  { %2755 = vmatprep.subr.bf16.mxu0 %v4004_v26  ;;  %2787 = vmatprep.subr.bf16.mxu1 %v4005_v6 }
 0x781   :  { %2757 = vmatpush3.bf16.msra.mxu0 %v4006_v7  ;;  %2789 = vmatpush3.bf16.msra.mxu1 %v4007_v39 }
 0x782   :  { %2759 = vmatprep.subr.bf16.mxu0 %v4008_v0  ;;  %2791 = vmatprep.subr.bf16.mxu1 %v4009_v47 }
 0x785   :  { %2761 = vmatpush3.bf16.msra.mxu0 %v4010_v28  ;;  %2793 = vmatpush3.bf16.msra.mxu1 %v4011_v20 }
 0x786   :  { %2220 = vmatprep.subr.msk.mxu0 %vm757_vm10, %v4012_v15  ;;  %2223 = vmatprep.subr.msk.mxu1 %vm757_vm10, %v4013_v36 }
 0x83b   :  { %v1780_v4 = vpop.f32.mrb[14].mxu0  ;;  %v1851_v11 = vpop.f32.mrb[14].mxu1 }
 0x83c   :  { %v1856_v63 = vsub.f32 %v1494_v31, %v1780_v4  ;;  %v1858_v5 = vsub.f32 %v1565_v46, %v1851_v11  ;;  %v1782_v9 = vpop.f32.mrb[15].mxu0  ;;  %v1853_v35 = vpop.f32.mrb[15].mxu1 }
 0x83d   :  { %v1857_v12 = vsub.f32 %v1496_v33, %v1782_v9  ;;  %v1859_v30 = vsub.f32 %v1567_v38, %v1853_v35 }
 0x83e   :  { %v1860_v50 = vmul.f32 %v1856_v63, %v1856_v63  ;;  %v1862_v51 = vmul.f32 %v1858_v5, %v1858_v5 }
 0x83f   :  { %v1861_v44 = vmul.f32 %v1857_v12, %v1857_v12  ;;  %v1863_v45 = vmul.f32 %v1859_v30, %v1859_v30 }
 0x841   :  { %1928 = vmatprep.mubr.f32.mxu0 %v1861_v44  ;;  %1998 = vmatprep.mubr.f32.mxu1 %v1863_v45 }
 0x842   :  { %1929 = vmatmul.mubr.f32.vlgmr.msra.gmra.mrb[16].mxu0 %v1860_v50  ;;  %1999 = vmatmul.mubr.f32.vlgmr.msra.gmra.mrb[16].mxu1 %v1862_v51 }
 0x843   :  { %2221 = vmatpush1.msk.msra.mxu0 %vm757_vm10, %v4014_v48  ;;  %2224 = vmatpush1.msk.msra.mxu1 %vm757_vm10, %v4015_v53 }
 0x844   :  { %2074 = vmatprep.mubr.f32.mxu0 %v4016_v37  ;;  %2145 = vmatprep.mubr.f32.mxu1 %v4016_v37 }
 0x915   :  { %v2468_v62 = vpop.f32.mrb[16].mxu0  ;;  %v2503_v40 = vpop.f32.mrb[16].mxu1 }
 0x916   :  { %v2469_v43 = vpop.f32.mrb[17].mxu0  ;;  %v2504_v16 = vpop.f32.mrb[17].mxu1 }
 0x917   :  { %v2470_v57 = vadd.f32 %v2469_v43, %v2468_v62  ;;  %v2505_v55 = vadd.f32 %v2504_v16, %v2503_v40 }
 0x919   :  { %v2001_v61 = vadd.f32 %v2505_v55, %v2470_v57 }
 0x91b   :  { %v2004_v49 = vmul.f32 0.00390625, %v2001_v61 }
 0x91d   :  { %v2005_v56 = vadd.f32 1e-05, %v2004_v49 }
 0x91f   :  { %2809 = vrsqrt.f32 %v2005_v56 }
 0x929   :  { %v2810_v58 = vpop.eup %2809 }
 0x92a   :  { %2222 = vmatmul.mubr.msk.f32.vlgmr.msra.gmra.mrb[18].mxu0 %vm753_vm11, %v2810_v58  ;;  %2225 = vmatmul.mubr.msk.f32.vlgmr.msra.gmra.mrb[18].mxu1 %vm753_vm11, %v2810_v58 }
 0x9fd   :  { %v2076_v54 = vpop.f32.mrb[18].mxu0  ;;  %v2147_v60 = vpop.f32.mrb[18].mxu1 }
 0x9fe   :  { %v2152_v8 = vmul.f32 %v2076_v54, %v1856_v63  ;;  %v2154_v42 = vmul.f32 %v2147_v60, %v1858_v5  ;;  %v2078_v23 = vpop.f32.mrb[19].mxu0  ;;  %v2149_v17 = vpop.f32.mrb[19].mxu1 }
 0x9ff   :  { %v2153_v29 = vmul.f32 %v2078_v23, %v1857_v12  ;;  %v2155_v24 = vmul.f32 %v2149_v17, %v1859_v30 }
 0xa00   :  { %v2156_v32 = vadd.f32 %v2811_v27, %v2152_v8  ;;  %v2158_v59 = vadd.f32 %v2812_v14, %v2154_v42 }
 0xa01   :  { %v2157_v34 = vadd.f32 %v2153_v29, %v4017_v19  ;;  %v2159_v21 = vadd.f32 %v2155_v24, %v4018_v13 }
 0xa02   :  { %vm2160_vm0 = vcmp.ge.f32.partialorder %v2156_v32, 0.0  ;;  %v2164_v22 = vmul.f32 0.01, %v2156_v32  ;;  %vm2162_vm1 = vcmp.ge.f32.partialorder %v2158_v59, 0.0  ;;  %v2166_v26 = vmul.f32 0.01, %v2158_v59 }
 0xa03   :  { %vm2161_vm2 = vcmp.ge.f32.partialorder %v2157_v34, 0.0  ;;  %v2165_v6 = vmul.f32 0.01, %v2157_v34  ;;  %vm2163_vm3 = vcmp.ge.f32.partialorder %v2159_v21, 0.0  ;;  %v2167_v7 = vmul.f32 0.01, %v2159_v21 }
 0xa04   :  { %v2168_v39 = vsel %vm2160_vm0, %v2156_v32, %v2164_v22  ;;  %v2170_v0 = vsel %vm2162_vm1, %v2158_v59, %v2166_v26 }
 0xa05   :  { %v2169_v47 = vsel %vm2161_vm2, %v2157_v34, %v2165_v6  ;;  %v2171_v28 = vsel %vm2163_vm3, %v2159_v21, %v2167_v7 }
 0xa06   :  { %v2176_v20 = vcombine.low %v2168_v39, %v2169_v47  ;;  %v2177_v15 = vcombine.low %v2170_v0, %v2171_v28 }
 0xa08   :  { %2180 = vst [vmem:[%s3893_s6] sm:$0xff] %v2176_v20  ;;  %2181 = vst [vmem:[%s3893_s6 + $0x8] sm:$0xff] %v2177_v15 }

</bundles_post_ra>
